<compile_context>
chip_gen: v7x
topology: tpu7x:2x2x1
jax: 0.10.0
libtpu: 0.0.40
codegen_flags: <defaults>
</compile_context>

<pallas_src>
import functools

import jax
import jax.numpy as jnp
from jax.experimental import pallas as pl
from jax.experimental.pallas import tpu as pltpu


def _round_up(x, m):
    return (x + m - 1) // m * m


def _mcvc_kernel(x_ref, eps_ref,
                 w1_ref, b1_ref, w2_ref, b2_ref, w3_ref, b3_ref,
                 wh_ref, bh_ref, w4_ref, b4_ref, w5_ref, b5_ref,
                 out_ref, *, n_labels, z_pad, z_eff):
    """One batch tile.

    Weight refs are per-layer padded: w*: [Kpad, Npad] bf16, b*: [1, Npad] f32.
    wh/bh hold the fused (mu | log_var) head: columns [0,z_pad) = mu,
    [z_pad, 2*z_pad) = log_var.  Padded weight columns/rows are zero, so padded
    lanes stay exactly 0 through every Linear/ReLU stage; only the final
    softmax needs an explicit lane mask.
    """
    f32 = jnp.float32

    def dense(a, w_ref, b_ref, *, relu=True):
        y = jnp.dot(a.astype(jnp.bfloat16), w_ref[...],
                    preferred_element_type=f32) + b_ref[...]
        return jnp.maximum(y, 0.0) if relu else y

    # ---- encoder: 3 x (Linear + ReLU) -------------------------------------
    h = dense(x_ref[...], w1_ref, b1_ref)
    h = dense(h, w2_ref, b2_ref)
    h = dense(h, w3_ref, b3_ref)

    # ---- fused mu | log_var head, Normal rsample ---------------------------
    mulv = dense(h, wh_ref, bh_ref, relu=False)          # [TB, 2*z_pad]
    mu = mulv[:, :z_eff]                                  # [TB, z_eff]
    log_var = mulv[:, z_pad:z_pad + z_eff]                # [TB, z_eff]
    std = jnp.exp(0.5 * log_var)                          # == exp(log_var)**0.5
    z = mu + std * eps_ref[...]                           # eps padded lanes are 0

    # ---- classifier: Linear + ReLU, Linear + masked softmax ----------------
    # TODO(synk): if bundle dumps show vld/vst spills at tb>=256 on v5e, split
    # this elementwise tail into 64-128 row sub-chunks (unrolled fori_loop).
    h4 = dense(z, w4_ref, b4_ref)
    logits = dense(h4, w5_ref, b5_ref, relu=False)        # [TB, n_pad]

    lane = jax.lax.broadcasted_iota(jnp.int32, logits.shape, dimension=1)
    logits = jnp.where(lane < n_labels, logits, -jnp.inf)

    m = jnp.max(logits, axis=-1, keepdims=True)
    e = jnp.exp(logits - m)                               # masked lanes -> 0
    denom = jnp.sum(e, axis=-1, keepdims=True)
    out_ref[...] = e * pl.reciprocal(denom, approx=True)


def _pad_weight(w, k_pad, n_pad, dtype):
    k, n = w.shape
    return jnp.zeros((k_pad, n_pad), dtype).at[:k, :n].set(w.astype(dtype))


def _pad_bias(b, n_pad):
    b = b.reshape(-1).astype(jnp.float32)
    return jnp.zeros((1, n_pad), jnp.float32).at[0, :b.size].set(b)


def _compiler_params():
    kwargs = dict(dimension_semantics=("parallel",))
    try:
        cap = pltpu.get_tpu_info().vmem_capacity_bytes
        # ~75% of physical VMEM, capped at 96 MiB (generous on v5e/v6e's
        # 128 MiB, safe on v7x's 64 MiB).
        kwargs["vmem_limit_bytes"] = int(min(96 * 2 ** 20, cap * 3 // 4))
    except Exception:
        pass  # keep the compiler's default scoped-VMEM limit
    return pltpu.CompilerParams(**kwargs)


def mcvc_light_forward(x, eps, params, *, tb=None):
    """x: [B, x_dims] f32, eps: [B, z_dim] f32, params: dict of [in,out] weights."""
    B, x_dims = x.shape
    z_dim = eps.shape[1]
    h1 = params["w1"].shape[1]
    h2 = params["w2"].shape[1]
    h3 = params["w3"].shape[1]
    n_half = params["w4"].shape[1]
    n_labels = params["w5"].shape[1]

    # ---- per-layer padded widths -------------------------------------------
    x_in = _round_up(x_dims, 8)          # contraction dim of fc1 (sublane-aligned)
    h1p = _round_up(h1, 128)
    h2p = _round_up(h2, 128)
    h3p = _round_up(h3, 128)
    zp = _round_up(z_dim, 128)           # lane width of each half of the fused head
    z_eff = _round_up(z_dim, 8)          # width z/eps are actually computed at
    nhp = _round_up(n_half, 128)
    np_ = _round_up(n_labels, 128)       # lane-dense output slab width

    # ---- batch tiling --------------------------------------------------------
    if tb is None:
        if B <= 128:
            tb = max(8, _round_up(B, 8))
        else:
            # Target ~256-row tiles with >= 2 grid steps (v7x megacore + DMA
            # pipelining) while keeping batch-padding waste < 8 rows per step.
            n_steps = max(2, pl.cdiv(B, 256))
            tb = _round_up(pl.cdiv(B, n_steps), 8)
    b_pad = _round_up(B, tb)

    # ---- inputs: copy/pad only when the raw arrays don't already conform ----
    x_p = x
    if (b_pad, x_in) != tuple(x.shape):
        x_p = jnp.zeros((b_pad, x_in), jnp.float32).at[:B, :x_dims].set(x)
    eps_p = eps
    if (b_pad, z_eff) != tuple(eps.shape):
        eps_p = jnp.zeros((b_pad, z_eff), jnp.float32).at[:B, :z_dim].set(eps)

    # ---- per-layer padded weights (bf16) and biases (f32) -------------------
    wd = jnp.bfloat16
    w1 = _pad_weight(params["w1"], x_in, h1p, wd); b1 = _pad_bias(params["b1"], h1p)
    w2 = _pad_weight(params["w2"], h1p, h2p, wd); b2 = _pad_bias(params["b2"], h2p)
    w3 = _pad_weight(params["w3"], h2p, h3p, wd); b3 = _pad_bias(params["b3"], h3p)
    # fused mu | log_var head
    wh = jnp.zeros((h3p, 2 * zp), wd)
    wh = wh.at[:h3, :z_dim].set(params["wmu"].astype(wd))
    wh = wh.at[:h3, zp:zp + z_dim].set(params["wlv"].astype(wd))
    bh = jnp.zeros((1, 2 * zp), jnp.float32)
    bh = bh.at[0, :z_dim].set(params["bmu"].reshape(-1))
    bh = bh.at[0, zp:zp + z_dim].set(params["blv"].reshape(-1))
    w4 = _pad_weight(params["w4"], z_eff, nhp, wd); b4 = _pad_bias(params["b4"], nhp)
    w5 = _pad_weight(params["w5"], nhp, np_, wd); b5 = _pad_bias(params["b5"], np_)

    consts = (w1, b1, w2, b2, w3, b3, wh, bh, w4, b4, w5, b5)

    kernel = functools.partial(_mcvc_kernel, n_labels=n_labels, z_pad=zp, z_eff=z_eff)

    layer_dims = [(x_dims, h1), (h1, h2), (h2, h3), (h3, 2 * z_dim),
                  (z_dim, n_half), (n_half, n_labels)]
    cost = pl.CostEstimate(
        flops=2 * B * sum(k * n for k, n in layer_dims),
        transcendentals=B * (z_dim + n_labels),
        bytes_accessed=(x_p.size + eps_p.size) * 4
        + sum(int(w.size) * 2 + int(b.size) * 4 for w, b in zip(consts[::2], consts[1::2]))
        + b_pad * np_ * 4,
    )

    def batch_spec(width):
        return pl.BlockSpec((tb, width), lambda i: (i, 0))

    def const_spec(shape, use_buffered):
        ndim = len(shape)
        index_map = lambda i: (0,) * ndim
        if use_buffered:
            # Constant index_map -> single buffer is enough; halves resident
            # weight VMEM (matters on v7x's 64 MiB).
            return pl.BlockSpec(shape, index_map, pipeline_mode=pl.Buffered(1))
        return pl.BlockSpec(shape, index_map)

    def run(use_buffered):
        in_specs = [batch_spec(x_in), batch_spec(z_eff)]
        in_specs += [const_spec(c.shape, use_buffered) for c in consts]
        return pl.pallas_call(
            kernel,
            out_shape=jax.ShapeDtypeStruct((b_pad, np_), jnp.float32),
            grid=(b_pad // tb,),
            in_specs=in_specs,
            out_specs=batch_spec(np_),
            compiler_params=_compiler_params(),
            cost_estimate=cost,
        )(x_p, eps_p, *consts)

    try:
        out = run(True)
    except Exception:
        # Fallback for jax versions without BlockSpec(pipeline_mode=...).
        out = run(False)

    return out[:B, :n_labels]


def init_params(key, x_dims, z_dim, n_labels, h_dim1, h_dim2, h_dim3):
    """nn.Linear-shaped params stored transposed as [in, out]; biases [1, out]."""
    dims = {
        "1": (x_dims, h_dim1),
        "2": (h_dim1, h_dim2),
        "3": (h_dim2, h_dim3),
        "mu": (h_dim3, z_dim),
        "lv": (h_dim3, z_dim),
        "4": (z_dim, n_labels // 2),
        "5": (n_labels // 2, n_labels),
    }
    params = {}
    for name, (din, dout) in dims.items():
        key, kw, kb = jax.random.split(key, 3)
        bound = 1.0 / jnp.sqrt(din)
        params[f"w{name}"] = jax.random.uniform(
            kw, (din, dout), jnp.float32, -bound, bound)
        params[f"b{name}"] = jax.random.uniform(
            kb, (1, dout), jnp.float32, -bound, bound)
    return params


def reference_forward(x, eps, params):
    """Pure-JAX f32 reference mirroring the PyTorch forward()."""
    relu = lambda v: jnp.maximum(v, 0.0)
    h = relu(x @ params["w1"] + params["b1"])
    h = relu(h @ params["w2"] + params["b2"])
    h = relu(h @ params["w3"] + params["b3"])
    mu = h @ params["wmu"] + params["bmu"]
    log_var = h @ params["wlv"] + params["blv"]
    z = mu + jnp.exp(log_var) ** 0.5 * eps
    h4 = relu(z @ params["w4"] + params["b4"])
    logits = h4 @ params["w5"] + params["b5"]
    return jax.nn.softmax(logits, axis=-1)


def _check(B, x_dims, z_dim, n_labels, h1, h2, h3, seed, tb=None):
    key = jax.random.PRNGKey(seed)
    key, kx, ke, kp = jax.random.split(key, 4)
    x = jax.random.normal(kx, (B, x_dims), jnp.float32)
    eps = jax.random.normal(ke, (B, z_dim), jnp.float32)      # rsample noise
    params = init_params(kp, x_dims, z_dim, n_labels, h1, h2, h3)

    pyz = mcvc_light_forward(x, eps, params, tb=tb)
    jax.block_until_ready(pyz)

    ref = reference_forward(x, eps, params)
    assert pyz.shape == (B, n_labels)
    # bf16 matmuls + approx reciprocal -> slightly relaxed tolerance.
    assert jnp.allclose(pyz, ref, atol=2e-2, rtol=2e-2), "mismatch vs reference"
    assert jnp.allclose(jnp.sum(pyz, axis=-1), 1.0, atol=5e-3), "softmax rows != 1"


if __name__ == "__main__":
    # Small shapes consistent with the module's forward pass.
    # `y` (labels) is unused by forward(), matching the PyTorch module.
    _check(B=8, x_dims=32, z_dim=16, n_labels=8, h1=32, h2=32, h3=32, seed=0)
    # Exercise the multi-step batch grid (grid=3) and the row-padding path.
    _check(B=40, x_dims=24, z_dim=16, n_labels=10, h1=48, h2=40, h3=32,
           seed=1, tb=16)
    print("KERNEL_OK")
</pallas_src>

<mosaic_0001>
module attributes {stable_mosaic.version = 11 : i64} {
  func.func @_mcvc_kernel(%arg0: i32, %arg1: memref<8x32xf32, #tpu.memory_space<vmem>>, %arg2: memref<8x16xf32, #tpu.memory_space<vmem>>, %arg3: memref<32x128xbf16, #tpu.memory_space<vmem>>, %arg4: memref<1x128xf32, #tpu.memory_space<vmem>>, %arg5: memref<128x128xbf16, #tpu.memory_space<vmem>>, %arg6: memref<1x128xf32, #tpu.memory_space<vmem>>, %arg7: memref<128x128xbf16, #tpu.memory_space<vmem>>, %arg8: memref<1x128xf32, #tpu.memory_space<vmem>>, %arg9: memref<128x256xbf16, #tpu.memory_space<vmem>>, %arg10: memref<1x256xf32, #tpu.memory_space<vmem>>, %arg11: memref<16x128xbf16, #tpu.memory_space<vmem>>, %arg12: memref<1x128xf32, #tpu.memory_space<vmem>>, %arg13: memref<128x128xbf16, #tpu.memory_space<vmem>>, %arg14: memref<1x128xf32, #tpu.memory_space<vmem>>, %arg15: memref<8x128xf32, #tpu.memory_space<vmem>>) attributes {dimension_semantics = [#tpu.dimension_semantics<parallel>], iteration_bounds = array<i64: 1>, scalar_prefetch = 0 : i64, scratch_operands = 0 : i64, tpu.core_type = #tpu.core_type<tc>, window_params = [{transform_indices = @transform_0, window_bounds = array<i64: 8, 32>}, {transform_indices = @transform_1, window_bounds = array<i64: 8, 16>}, {pipeline_mode = #tpu.pipeline_mode<synchronous>, transform_indices = @transform_2, window_bounds = array<i64: 32, 128>}, {pipeline_mode = #tpu.pipeline_mode<synchronous>, transform_indices = @transform_3, window_bounds = array<i64: 1, 128>}, {pipeline_mode = #tpu.pipeline_mode<synchronous>, transform_indices = @transform_4, window_bounds = array<i64: 128, 128>}, {pipeline_mode = #tpu.pipeline_mode<synchronous>, transform_indices = @transform_5, window_bounds = array<i64: 1, 128>}, {pipeline_mode = #tpu.pipeline_mode<synchronous>, transform_indices = @transform_6, window_bounds = array<i64: 128, 128>}, {pipeline_mode = #tpu.pipeline_mode<synchronous>, transform_indices = @transform_7, window_bounds = array<i64: 1, 128>}, {pipeline_mode = #tpu.pipeline_mode<synchronous>, transform_indices = @transform_8, window_bounds = array<i64: 128, 256>}, {pipeline_mode = #tpu.pipeline_mode<synchronous>, transform_indices = @transform_9, window_bounds = array<i64: 1, 256>}, {pipeline_mode = #tpu.pipeline_mode<synchronous>, transform_indices = @transform_10, window_bounds = array<i64: 16, 128>}, {pipeline_mode = #tpu.pipeline_mode<synchronous>, transform_indices = @transform_11, window_bounds = array<i64: 1, 128>}, {pipeline_mode = #tpu.pipeline_mode<synchronous>, transform_indices = @transform_12, window_bounds = array<i64: 128, 128>}, {pipeline_mode = #tpu.pipeline_mode<synchronous>, transform_indices = @transform_13, window_bounds = array<i64: 1, 128>}, {transform_indices = @transform_14, window_bounds = array<i64: 8, 128>}]} {
    %c0 = arith.constant 0 : index
    %c0_0 = arith.constant 0 : index
    %0 = vector.load %arg1[%c0, %c0_0] : memref<8x32xf32, #tpu.memory_space<vmem>>, vector<8x32xf32>
    %1 = arith.truncf %0 : vector<8x32xf32> to vector<8x32xbf16>
    %c0_1 = arith.constant 0 : index
    %c0_2 = arith.constant 0 : index
    %2 = vector.load %arg3[%c0_1, %c0_2] : memref<32x128xbf16, #tpu.memory_space<vmem>>, vector<32x128xbf16>
    %cst = arith.constant dense<0.000000e+00> : vector<8x128xf32>
    %3 = tpu.matmul %1, %2, %cst {dimension_numbers = #tpu.dot_dimension_numbers<[1], [0], [0], [1], [0, 0, 1, 1], [], []>} : vector<8x32xbf16>, vector<32x128xbf16>, vector<8x128xf32> -> vector<8x128xf32>
    %c0_3 = arith.constant 0 : index
    %c0_4 = arith.constant 0 : index
    %4 = vector.load %arg4[%c0_3, %c0_4] : memref<1x128xf32, #tpu.memory_space<vmem>>, vector<1x128xf32>
    %5 = vector.broadcast %4 : vector<1x128xf32> to vector<8x128xf32>
    %6 = arith.addf %3, %5 : vector<8x128xf32>
    %cst_5 = arith.constant 0.000000e+00 : f32
    %7 = vector.broadcast %cst_5 : f32 to vector<8x128xf32>
    %8 = arith.maximumf %6, %7 : vector<8x128xf32>
    %9 = arith.truncf %8 : vector<8x128xf32> to vector<8x128xbf16>
    %c0_6 = arith.constant 0 : index
    %c0_7 = arith.constant 0 : index
    %10 = vector.load %arg5[%c0_6, %c0_7] : memref<128x128xbf16, #tpu.memory_space<vmem>>, vector<128x128xbf16>
    %cst_8 = arith.constant dense<0.000000e+00> : vector<8x128xf32>
    %11 = tpu.matmul %9, %10, %cst_8 {dimension_numbers = #tpu.dot_dimension_numbers<[1], [0], [0], [1], [0, 0, 1, 1], [], []>} : vector<8x128xbf16>, vector<128x128xbf16>, vector<8x128xf32> -> vector<8x128xf32>
    %c0_9 = arith.constant 0 : index
    %c0_10 = arith.constant 0 : index
    %12 = vector.load %arg6[%c0_9, %c0_10] : memref<1x128xf32, #tpu.memory_space<vmem>>, vector<1x128xf32>
    %13 = vector.broadcast %12 : vector<1x128xf32> to vector<8x128xf32>
    %14 = arith.addf %11, %13 : vector<8x128xf32>
    %cst_11 = arith.constant 0.000000e+00 : f32
    %15 = vector.broadcast %cst_11 : f32 to vector<8x128xf32>
    %16 = arith.maximumf %14, %15 : vector<8x128xf32>
    %17 = arith.truncf %16 : vector<8x128xf32> to vector<8x128xbf16>
    %c0_12 = arith.constant 0 : index
    %c0_13 = arith.constant 0 : index
    %18 = vector.load %arg7[%c0_12, %c0_13] : memref<128x128xbf16, #tpu.memory_space<vmem>>, vector<128x128xbf16>
    %cst_14 = arith.constant dense<0.000000e+00> : vector<8x128xf32>
    %19 = tpu.matmul %17, %18, %cst_14 {dimension_numbers = #tpu.dot_dimension_numbers<[1], [0], [0], [1], [0, 0, 1, 1], [], []>} : vector<8x128xbf16>, vector<128x128xbf16>, vector<8x128xf32> -> vector<8x128xf32>
    %c0_15 = arith.constant 0 : index
    %c0_16 = arith.constant 0 : index
    %20 = vector.load %arg8[%c0_15, %c0_16] : memref<1x128xf32, #tpu.memory_space<vmem>>, vector<1x128xf32>
    %21 = vector.broadcast %20 : vector<1x128xf32> to vector<8x128xf32>
    %22 = arith.addf %19, %21 : vector<8x128xf32>
    %cst_17 = arith.constant 0.000000e+00 : f32
    %23 = vector.broadcast %cst_17 : f32 to vector<8x128xf32>
    %24 = arith.maximumf %22, %23 : vector<8x128xf32>
    %25 = arith.truncf %24 : vector<8x128xf32> to vector<8x128xbf16>
    %c0_18 = arith.constant 0 : index
    %c0_19 = arith.constant 0 : index
    %26 = vector.load %arg9[%c0_18, %c0_19] : memref<128x256xbf16, #tpu.memory_space<vmem>>, vector<128x256xbf16>
    %cst_20 = arith.constant dense<0.000000e+00> : vector<8x256xf32>
    %27 = tpu.matmul %25, %26, %cst_20 {dimension_numbers = #tpu.dot_dimension_numbers<[1], [0], [0], [1], [0, 0, 1, 1], [], []>} : vector<8x128xbf16>, vector<128x256xbf16>, vector<8x256xf32> -> vector<8x256xf32>
    %c0_21 = arith.constant 0 : index
    %c0_22 = arith.constant 0 : index
    %28 = vector.load %arg10[%c0_21, %c0_22] : memref<1x256xf32, #tpu.memory_space<vmem>>, vector<1x256xf32>
    %29 = vector.broadcast %28 : vector<1x256xf32> to vector<8x256xf32>
    %30 = arith.addf %27, %29 : vector<8x256xf32>
    %31 = vector.extract_strided_slice %30 {offsets = [0, 0], sizes = [8, 16], strides = [1, 1]} : vector<8x256xf32> to vector<8x16xf32>
    %32 = vector.extract_strided_slice %30 {offsets = [0, 128], sizes = [8, 16], strides = [1, 1]} : vector<8x256xf32> to vector<8x16xf32>
    %cst_23 = arith.constant 5.000000e-01 : f32
    %33 = vector.broadcast %cst_23 : f32 to vector<8x16xf32>
    %34 = arith.mulf %33, %32 : vector<8x16xf32>
    %35 = math.exp %34 : vector<8x16xf32>
    %c0_24 = arith.constant 0 : index
    %c0_25 = arith.constant 0 : index
    %36 = vector.load %arg2[%c0_24, %c0_25] : memref<8x16xf32, #tpu.memory_space<vmem>>, vector<8x16xf32>
    %37 = arith.mulf %35, %36 : vector<8x16xf32>
    %38 = arith.addf %31, %37 : vector<8x16xf32>
    %39 = arith.truncf %38 : vector<8x16xf32> to vector<8x16xbf16>
    %c0_26 = arith.constant 0 : index
    %c0_27 = arith.constant 0 : index
    %40 = vector.load %arg11[%c0_26, %c0_27] : memref<16x128xbf16, #tpu.memory_space<vmem>>, vector<16x128xbf16>
    %cst_28 = arith.constant dense<0.000000e+00> : vector<8x128xf32>
    %41 = tpu.matmul %39, %40, %cst_28 {dimension_numbers = #tpu.dot_dimension_numbers<[1], [0], [0], [1], [0, 0, 1, 1], [], []>} : vector<8x16xbf16>, vector<16x128xbf16>, vector<8x128xf32> -> vector<8x128xf32>
    %c0_29 = arith.constant 0 : index
    %c0_30 = arith.constant 0 : index
    %42 = vector.load %arg12[%c0_29, %c0_30] : memref<1x128xf32, #tpu.memory_space<vmem>>, vector<1x128xf32>
    %43 = vector.broadcast %42 : vector<1x128xf32> to vector<8x128xf32>
    %44 = arith.addf %41, %43 : vector<8x128xf32>
    %cst_31 = arith.constant 0.000000e+00 : f32
    %45 = vector.broadcast %cst_31 : f32 to vector<8x128xf32>
    %46 = arith.maximumf %44, %45 : vector<8x128xf32>
    %47 = arith.truncf %46 : vector<8x128xf32> to vector<8x128xbf16>
    %c0_32 = arith.constant 0 : index
    %c0_33 = arith.constant 0 : index
    %48 = vector.load %arg13[%c0_32, %c0_33] : memref<128x128xbf16, #tpu.memory_space<vmem>>, vector<128x128xbf16>
    %cst_34 = arith.constant dense<0.000000e+00> : vector<8x128xf32>
    %49 = tpu.matmul %47, %48, %cst_34 {dimension_numbers = #tpu.dot_dimension_numbers<[1], [0], [0], [1], [0, 0, 1, 1], [], []>} : vector<8x128xbf16>, vector<128x128xbf16>, vector<8x128xf32> -> vector<8x128xf32>
    %c0_35 = arith.constant 0 : index
    %c0_36 = arith.constant 0 : index
    %50 = vector.load %arg14[%c0_35, %c0_36] : memref<1x128xf32, #tpu.memory_space<vmem>>, vector<1x128xf32>
    %51 = vector.broadcast %50 : vector<1x128xf32> to vector<8x128xf32>
    %52 = arith.addf %49, %51 : vector<8x128xf32>
    %53 = tpu.iota {dimensions = array<i32: 1>} : vector<8x128xi32>
    %c8_i32 = arith.constant 8 : i32
    %54 = vector.broadcast %c8_i32 : i32 to vector<8x128xi32>
    %55 = arith.cmpi slt, %53, %54 : vector<8x128xi32>
    %cst_37 = arith.constant 0xFF800000 : f32
    %56 = vector.broadcast %cst_37 : f32 to vector<8x128xf32>
    %57 = arith.select %55, %52, %56 : vector<8x128xi1>, vector<8x128xf32>
    %cst_38 = arith.constant dense<0xFF800000> : vector<8xf32>
    %58 = vector.multi_reduction <maximumf>, %57, %cst_38 [1] : vector<8x128xf32> to vector<8xf32>
    %59 = vector.shape_cast %58 : vector<8xf32> to vector<8x1xf32>
    %60 = vector.broadcast %59 : vector<8x1xf32> to vector<8x128xf32>
    %61 = arith.subf %57, %60 : vector<8x128xf32>
    %62 = math.exp %61 : vector<8x128xf32>
    %cst_39 = arith.constant dense<0.000000e+00> : vector<8xf32>
    %63 = vector.multi_reduction <add>, %62, %cst_39 [1] : vector<8x128xf32> to vector<8xf32>
    %64 = vector.shape_cast %63 : vector<8xf32> to vector<8x1xf32>
    %65 = tpu.reciprocal %64 {approx = true} : vector<8x1xf32> -> vector<8x1xf32>
    %66 = vector.broadcast %65 : vector<8x1xf32> to vector<8x128xf32>
    %67 = arith.mulf %62, %66 : vector<8x128xf32>
    %c0_40 = arith.constant 0 : index
    %c0_41 = arith.constant 0 : index
    %68 = vector.load %arg15[%c0_40, %c0_41] : memref<8x128xf32, #tpu.memory_space<vmem>>, vector<8x128xf32>
    tpu.vector_store %arg15[%c0_40, %c0_41], %67 {strides = array<i32>} : memref<8x128xf32, #tpu.memory_space<vmem>>, vector<8x128xf32>,
    return
  }
  func.func @transform_0(%arg0: i32) -> (i32, i32) {
    %c0_i32 = arith.constant 0 : i32
    %c0_i32_0 = arith.constant 0 : i32
    return %arg0, %c0_i32 : i32, i32
  }
  func.func @transform_1(%arg0: i32) -> (i32, i32) {
    %c0_i32 = arith.constant 0 : i32
    %c0_i32_0 = arith.constant 0 : i32
    return %arg0, %c0_i32 : i32, i32
  }
  func.func @transform_2(%arg0: i32) -> (i32, i32) {
    %c0_i32 = arith.constant 0 : i32
    %c0_i32_0 = arith.constant 0 : i32
    %c0_i32_1 = arith.constant 0 : i32
    return %c0_i32, %c0_i32_0 : i32, i32
  }
  func.func @transform_3(%arg0: i32) -> (i32, i32) {
    %c0_i32 = arith.constant 0 : i32
    %c0_i32_0 = arith.constant 0 : i32
    %c0_i32_1 = arith.constant 0 : i32
    return %c0_i32, %c0_i32_0 : i32, i32
  }
  func.func @transform_4(%arg0: i32) -> (i32, i32) {
    %c0_i32 = arith.constant 0 : i32
    %c0_i32_0 = arith.constant 0 : i32
    %c0_i32_1 = arith.constant 0 : i32
    return %c0_i32, %c0_i32_0 : i32, i32
  }
  func.func @transform_5(%arg0: i32) -> (i32, i32) {
    %c0_i32 = arith.constant 0 : i32
    %c0_i32_0 = arith.constant 0 : i32
    %c0_i32_1 = arith.constant 0 : i32
    return %c0_i32, %c0_i32_0 : i32, i32
  }
  func.func @transform_6(%arg0: i32) -> (i32, i32) {
    %c0_i32 = arith.constant 0 : i32
    %c0_i32_0 = arith.constant 0 : i32
    %c0_i32_1 = arith.constant 0 : i32
    return %c0_i32, %c0_i32_0 : i32, i32
  }
  func.func @transform_7(%arg0: i32) -> (i32, i32) {
    %c0_i32 = arith.constant 0 : i32
    %c0_i32_0 = arith.constant 0 : i32
    %c0_i32_1 = arith.constant 0 : i32
    return %c0_i32, %c0_i32_0 : i32, i32
  }
  func.func @transform_8(%arg0: i32) -> (i32, i32) {
    %c0_i32 = arith.constant 0 : i32
    %c0_i32_0 = arith.constant 0 : i32
    %c0_i32_1 = arith.constant 0 : i32
    return %c0_i32, %c0_i32_0 : i32, i32
  }
  func.func @transform_9(%arg0: i32) -> (i32, i32) {
    %c0_i32 = arith.constant 0 : i32
    %c0_i32_0 = arith.constant 0 : i32
    %c0_i32_1 = arith.constant 0 : i32
    return %c0_i32, %c0_i32_0 : i32, i32
  }
  func.func @transform_10(%arg0: i32) -> (i32, i32) {
    %c0_i32 = arith.constant 0 : i32
    %c0_i32_0 = arith.constant 0 : i32
    %c0_i32_1 = arith.constant 0 : i32
    return %c0_i32, %c0_i32_0 : i32, i32
  }
  func.func @transform_11(%arg0: i32) -> (i32, i32) {
    %c0_i32 = arith.constant 0 : i32
    %c0_i32_0 = arith.constant 0 : i32
    %c0_i32_1 = arith.constant 0 : i32
    return %c0_i32, %c0_i32_0 : i32, i32
  }
  func.func @transform_12(%arg0: i32) -> (i32, i32) {
    %c0_i32 = arith.constant 0 : i32
    %c0_i32_0 = arith.constant 0 : i32
    %c0_i32_1 = arith.constant 0 : i32
    return %c0_i32, %c0_i32_0 : i32, i32
  }
  func.func @transform_13(%arg0: i32) -> (i32, i32) {
    %c0_i32 = arith.constant 0 : i32
    %c0_i32_0 = arith.constant 0 : i32
    %c0_i32_1 = arith.constant 0 : i32
    return %c0_i32, %c0_i32_0 : i32, i32
  }
  func.func @transform_14(%arg0: i32) -> (i32, i32) {
    %c0_i32 = arith.constant 0 : i32
    %c0_i32_0 = arith.constant 0 : i32
    return %arg0, %c0_i32 : i32, i32
  }
}

module attributes {stable_mosaic.version = 11 : i64} {
  func.func @_mcvc_kernel(%arg0: i32, %arg1: memref<8x32xf32, #tpu.memory_space<vmem>>, %arg2: memref<8x16xf32, #tpu.memory_space<vmem>>, %arg3: memref<32x128xbf16, #tpu.memory_space<vmem>>, %arg4: memref<1x128xf32, #tpu.memory_space<vmem>>, %arg5: memref<128x128xbf16, #tpu.memory_space<vmem>>, %arg6: memref<1x128xf32, #tpu.memory_space<vmem>>, %arg7: memref<128x128xbf16, #tpu.memory_space<vmem>>, %arg8: memref<1x128xf32, #tpu.memory_space<vmem>>, %arg9: memref<128x256xbf16, #tpu.memory_space<vmem>>, %arg10: memref<1x256xf32, #tpu.memory_space<vmem>>, %arg11: memref<16x128xbf16, #tpu.memory_space<vmem>>, %arg12: memref<1x128xf32, #tpu.memory_space<vmem>>, %arg13: memref<128x128xbf16, #tpu.memory_space<vmem>>, %arg14: memref<1x128xf32, #tpu.memory_space<vmem>>, %arg15: memref<8x128xf32, #tpu.memory_space<vmem>>) attributes {dimension_semantics = [#tpu.dimension_semantics<parallel>], iteration_bounds = array<i64: 1>, scalar_prefetch = 0 : i64, scratch_operands = 0 : i64, tpu.core_type = #tpu.core_type<tc>, window_params = [{transform_indices = @transform_0, window_bounds = array<i64: 8, 32>}, {transform_indices = @transform_1, window_bounds = array<i64: 8, 16>}, {pipeline_mode = #tpu.pipeline_mode<synchronous>, transform_indices = @transform_2, window_bounds = array<i64: 32, 128>}, {pipeline_mode = #tpu.pipeline_mode<synchronous>, transform_indices = @transform_3, window_bounds = array<i64: 1, 128>}, {pipeline_mode = #tpu.pipeline_mode<synchronous>, transform_indices = @transform_4, window_bounds = array<i64: 128, 128>}, {pipeline_mode = #tpu.pipeline_mode<synchronous>, transform_indices = @transform_5, window_bounds = array<i64: 1, 128>}, {pipeline_mode = #tpu.pipeline_mode<synchronous>, transform_indices = @transform_6, window_bounds = array<i64: 128, 128>}, {pipeline_mode = #tpu.pipeline_mode<synchronous>, transform_indices = @transform_7, window_bounds = array<i64: 1, 128>}, {pipeline_mode = #tpu.pipeline_mode<synchronous>, transform_indices = @transform_8, window_bounds = array<i64: 128, 256>}, {pipeline_mode = #tpu.pipeline_mode<synchronous>, transform_indices = @transform_9, window_bounds = array<i64: 1, 256>}, {pipeline_mode = #tpu.pipeline_mode<synchronous>, transform_indices = @transform_10, window_bounds = array<i64: 16, 128>}, {pipeline_mode = #tpu.pipeline_mode<synchronous>, transform_indices = @transform_11, window_bounds = array<i64: 1, 128>}, {pipeline_mode = #tpu.pipeline_mode<synchronous>, transform_indices = @transform_12, window_bounds = array<i64: 128, 128>}, {pipeline_mode = #tpu.pipeline_mode<synchronous>, transform_indices = @transform_13, window_bounds = array<i64: 1, 128>}, {transform_indices = @transform_14, window_bounds = array<i64: 8, 128>}]} {
    %c0 = arith.constant 0 : index
    %c0_0 = arith.constant 0 : index
    %0 = vector.load %arg1[%c0, %c0_0] : memref<8x32xf32, #tpu.memory_space<vmem>>, vector<8x32xf32>
    %1 = arith.truncf %0 : vector<8x32xf32> to vector<8x32xbf16>
    %c0_1 = arith.constant 0 : index
    %c0_2 = arith.constant 0 : index
    %2 = vector.load %arg3[%c0_1, %c0_2] : memref<32x128xbf16, #tpu.memory_space<vmem>>, vector<32x128xbf16>
    %cst = arith.constant dense<0.000000e+00> : vector<8x128xf32>
    %3 = tpu.matmul %1, %2, %cst {dimension_numbers = #tpu.dot_dimension_numbers<[1], [0], [0], [1], [0, 0, 1, 1], [], []>} : vector<8x32xbf16>, vector<32x128xbf16>, vector<8x128xf32> -> vector<8x128xf32>
    %c0_3 = arith.constant 0 : index
    %c0_4 = arith.constant 0 : index
    %4 = vector.load %arg4[%c0_3, %c0_4] : memref<1x128xf32, #tpu.memory_space<vmem>>, vector<1x128xf32>
    %5 = vector.broadcast %4 : vector<1x128xf32> to vector<8x128xf32>
    %6 = arith.addf %3, %5 : vector<8x128xf32>
    %cst_5 = arith.constant 0.000000e+00 : f32
    %7 = vector.broadcast %cst_5 : f32 to vector<8x128xf32>
    %8 = arith.maximumf %6, %7 : vector<8x128xf32>
    %9 = arith.truncf %8 : vector<8x128xf32> to vector<8x128xbf16>
    %c0_6 = arith.constant 0 : index
    %c0_7 = arith.constant 0 : index
    %10 = vector.load %arg5[%c0_6, %c0_7] : memref<128x128xbf16, #tpu.memory_space<vmem>>, vector<128x128xbf16>
    %cst_8 = arith.constant dense<0.000000e+00> : vector<8x128xf32>
    %11 = tpu.matmul %9, %10, %cst_8 {dimension_numbers = #tpu.dot_dimension_numbers<[1], [0], [0], [1], [0, 0, 1, 1], [], []>} : vector<8x128xbf16>, vector<128x128xbf16>, vector<8x128xf32> -> vector<8x128xf32>
    %c0_9 = arith.constant 0 : index
    %c0_10 = arith.constant 0 : index
    %12 = vector.load %arg6[%c0_9, %c0_10] : memref<1x128xf32, #tpu.memory_space<vmem>>, vector<1x128xf32>
    %13 = vector.broadcast %12 : vector<1x128xf32> to vector<8x128xf32>
    %14 = arith.addf %11, %13 : vector<8x128xf32>
    %cst_11 = arith.constant 0.000000e+00 : f32
    %15 = vector.broadcast %cst_11 : f32 to vector<8x128xf32>
    %16 = arith.maximumf %14, %15 : vector<8x128xf32>
    %17 = arith.truncf %16 : vector<8x128xf32> to vector<8x128xbf16>
    %c0_12 = arith.constant 0 : index
    %c0_13 = arith.constant 0 : index
    %18 = vector.load %arg7[%c0_12, %c0_13] : memref<128x128xbf16, #tpu.memory_space<vmem>>, vector<128x128xbf16>
    %cst_14 = arith.constant dense<0.000000e+00> : vector<8x128xf32>
    %19 = tpu.matmul %17, %18, %cst_14 {dimension_numbers = #tpu.dot_dimension_numbers<[1], [0], [0], [1], [0, 0, 1, 1], [], []>} : vector<8x128xbf16>, vector<128x128xbf16>, vector<8x128xf32> -> vector<8x128xf32>
    %c0_15 = arith.constant 0 : index
    %c0_16 = arith.constant 0 : index
    %20 = vector.load %arg8[%c0_15, %c0_16] : memref<1x128xf32, #tpu.memory_space<vmem>>, vector<1x128xf32>
    %21 = vector.broadcast %20 : vector<1x128xf32> to vector<8x128xf32>
    %22 = arith.addf %19, %21 : vector<8x128xf32>
    %cst_17 = arith.constant 0.000000e+00 : f32
    %23 = vector.broadcast %cst_17 : f32 to vector<8x128xf32>
    %24 = arith.maximumf %22, %23 : vector<8x128xf32>
    %25 = arith.truncf %24 : vector<8x128xf32> to vector<8x128xbf16>
    %c0_18 = arith.constant 0 : index
    %c0_19 = arith.constant 0 : index
    %26 = vector.load %arg9[%c0_18, %c0_19] : memref<128x256xbf16, #tpu.memory_space<vmem>>, vector<128x256xbf16>
    %cst_20 = arith.constant dense<0.000000e+00> : vector<8x256xf32>
    %27 = tpu.matmul %25, %26, %cst_20 {dimension_numbers = #tpu.dot_dimension_numbers<[1], [0], [0], [1], [0, 0, 1, 1], [], []>} : vector<8x128xbf16>, vector<128x256xbf16>, vector<8x256xf32> -> vector<8x256xf32>
    %c0_21 = arith.constant 0 : index
    %c0_22 = arith.constant 0 : index
    %28 = vector.load %arg10[%c0_21, %c0_22] : memref<1x256xf32, #tpu.memory_space<vmem>>, vector<1x256xf32>
    %29 = vector.broadcast %28 : vector<1x256xf32> to vector<8x256xf32>
    %30 = arith.addf %27, %29 : vector<8x256xf32>
    %31 = vector.extract_strided_slice %30 {offsets = [0, 0], sizes = [8, 16], strides = [1, 1]} : vector<8x256xf32> to vector<8x16xf32>
    %32 = vector.extract_strided_slice %30 {offsets = [0, 128], sizes = [8, 16], strides = [1, 1]} : vector<8x256xf32> to vector<8x16xf32>
    %cst_23 = arith.constant 5.000000e-01 : f32
    %33 = vector.broadcast %cst_23 : f32 to vector<8x16xf32>
    %34 = arith.mulf %33, %32 : vector<8x16xf32>
    %35 = math.exp %34 : vector<8x16xf32>
    %c0_24 = arith.constant 0 : index
    %c0_25 = arith.constant 0 : index
    %36 = vector.load %arg2[%c0_24, %c0_25] : memref<8x16xf32, #tpu.memory_space<vmem>>, vector<8x16xf32>
    %37 = arith.mulf %35, %36 : vector<8x16xf32>
    %38 = arith.addf %31, %37 : vector<8x16xf32>
    %39 = arith.truncf %38 : vector<8x16xf32> to vector<8x16xbf16>
    %c0_26 = arith.constant 0 : index
    %c0_27 = arith.constant 0 : index
    %40 = vector.load %arg11[%c0_26, %c0_27] : memref<16x128xbf16, #tpu.memory_space<vmem>>, vector<16x128xbf16>
    %cst_28 = arith.constant dense<0.000000e+00> : vector<8x128xf32>
    %41 = tpu.matmul %39, %40, %cst_28 {dimension_numbers = #tpu.dot_dimension_numbers<[1], [0], [0], [1], [0, 0, 1, 1], [], []>} : vector<8x16xbf16>, vector<16x128xbf16>, vector<8x128xf32> -> vector<8x128xf32>
    %c0_29 = arith.constant 0 : index
    %c0_30 = arith.constant 0 : index
    %42 = vector.load %arg12[%c0_29, %c0_30] : memref<1x128xf32, #tpu.memory_space<vmem>>, vector<1x128xf32>
    %43 = vector.broadcast %42 : vector<1x128xf32> to vector<8x128xf32>
    %44 = arith.addf %41, %43 : vector<8x128xf32>
    %cst_31 = arith.constant 0.000000e+00 : f32
    %45 = vector.broadcast %cst_31 : f32 to vector<8x128xf32>
    %46 = arith.maximumf %44, %45 : vector<8x128xf32>
    %47 = arith.truncf %46 : vector<8x128xf32> to vector<8x128xbf16>
    %c0_32 = arith.constant 0 : index
    %c0_33 = arith.constant 0 : index
    %48 = vector.load %arg13[%c0_32, %c0_33] : memref<128x128xbf16, #tpu.memory_space<vmem>>, vector<128x128xbf16>
    %cst_34 = arith.constant dense<0.000000e+00> : vector<8x128xf32>
    %49 = tpu.matmul %47, %48, %cst_34 {dimension_numbers = #tpu.dot_dimension_numbers<[1], [0], [0], [1], [0, 0, 1, 1], [], []>} : vector<8x128xbf16>, vector<128x128xbf16>, vector<8x128xf32> -> vector<8x128xf32>
    %c0_35 = arith.constant 0 : index
    %c0_36 = arith.constant 0 : index
    %50 = vector.load %arg14[%c0_35, %c0_36] : memref<1x128xf32, #tpu.memory_space<vmem>>, vector<1x128xf32>
    %51 = vector.broadcast %50 : vector<1x128xf32> to vector<8x128xf32>
    %52 = arith.addf %49, %51 : vector<8x128xf32>
    %53 = tpu.iota {dimensions = array<i32: 1>} : vector<8x128xi32>
    %c8_i32 = arith.constant 8 : i32
    %54 = vector.broadcast %c8_i32 : i32 to vector<8x128xi32>
    %55 = arith.cmpi slt, %53, %54 : vector<8x128xi32>
    %cst_37 = arith.constant 0xFF800000 : f32
    %56 = vector.broadcast %cst_37 : f32 to vector<8x128xf32>
    %57 = arith.select %55, %52, %56 : vector<8x128xi1>, vector<8x128xf32>
    %cst_38 = arith.constant dense<0xFF800000> : vector<8xf32>
    %58 = vector.multi_reduction <maximumf>, %57, %cst_38 [1] : vector<8x128xf32> to vector<8xf32>
    %59 = vector.shape_cast %58 : vector<8xf32> to vector<8x1xf32>
    %60 = vector.broadcast %59 : vector<8x1xf32> to vector<8x128xf32>
    %61 = arith.subf %57, %60 : vector<8x128xf32>
    %62 = math.exp %61 : vector<8x128xf32>
    %cst_39 = arith.constant dense<0.000000e+00> : vector<8xf32>
    %63 = vector.multi_reduction <add>, %62, %cst_39 [1] : vector<8x128xf32> to vector<8xf32>
    %64 = vector.shape_cast %63 : vector<8xf32> to vector<8x1xf32>
    %65 = tpu.reciprocal %64 {approx = true} : vector<8x1xf32> -> vector<8x1xf32>
    %66 = vector.broadcast %65 : vector<8x1xf32> to vector<8x128xf32>
    %67 = arith.mulf %62, %66 : vector<8x128xf32>
    %c0_40 = arith.constant 0 : index
    %c0_41 = arith.constant 0 : index
    %68 = vector.load %arg15[%c0_40, %c0_41] : memref<8x128xf32, #tpu.memory_space<vmem>>, vector<8x128xf32>
    tpu.vector_store %arg15[%c0_40, %c0_41], %67 {strides = array<i32>} : memref<8x128xf32, #tpu.memory_space<vmem>>, vector<8x128xf32>,
    return
  }
  func.func @transform_0(%arg0: i32) -> (i32, i32) {
    %c0_i32 = arith.constant 0 : i32
    %c0_i32_0 = arith.constant 0 : i32
    return %arg0, %c0_i32 : i32, i32
  }
  func.func @transform_1(%arg0: i32) -> (i32, i32) {
    %c0_i32 = arith.constant 0 : i32
    %c0_i32_0 = arith.constant 0 : i32
    return %arg0, %c0_i32 : i32, i32
  }
  func.func @transform_2(%arg0: i32) -> (i32, i32) {
    %c0_i32 = arith.constant 0 : i32
    %c0_i32_0 = arith.constant 0 : i32
    %c0_i32_1 = arith.constant 0 : i32
    return %c0_i32, %c0_i32_0 : i32, i32
  }
  func.func @transform_3(%arg0: i32) -> (i32, i32) {
    %c0_i32 = arith.constant 0 : i32
    %c0_i32_0 = arith.constant 0 : i32
    %c0_i32_1 = arith.constant 0 : i32
    return %c0_i32, %c0_i32_0 : i32, i32
  }
  func.func @transform_4(%arg0: i32) -> (i32, i32) {
    %c0_i32 = arith.constant 0 : i32
    %c0_i32_0 = arith.constant 0 : i32
    %c0_i32_1 = arith.constant 0 : i32
    return %c0_i32, %c0_i32_0 : i32, i32
  }
  func.func @transform_5(%arg0: i32) -> (i32, i32) {
    %c0_i32 = arith.constant 0 : i32
    %c0_i32_0 = arith.constant 0 : i32
    %c0_i32_1 = arith.constant 0 : i32
    return %c0_i32, %c0_i32_0 : i32, i32
  }
  func.func @transform_6(%arg0: i32) -> (i32, i32) {
    %c0_i32 = arith.constant 0 : i32
    %c0_i32_0 = arith.constant 0 : i32
    %c0_i32_1 = arith.constant 0 : i32
    return %c0_i32, %c0_i32_0 : i32, i32
  }
  func.func @transform_7(%arg0: i32) -> (i32, i32) {
    %c0_i32 = arith.constant 0 : i32
    %c0_i32_0 = arith.constant 0 : i32
    %c0_i32_1 = arith.constant 0 : i32
    return %c0_i32, %c0_i32_0 : i32, i32
  }
  func.func @transform_8(%arg0: i32) -> (i32, i32) {
    %c0_i32 = arith.constant 0 : i32
    %c0_i32_0 = arith.constant 0 : i32
    %c0_i32_1 = arith.constant 0 : i32
    return %c0_i32, %c0_i32_0 : i32, i32
  }
  func.func @transform_9(%arg0: i32) -> (i32, i32) {
    %c0_i32 = arith.constant 0 : i32
    %c0_i32_0 = arith.constant 0 : i32
    %c0_i32_1 = arith.constant 0 : i32
    return %c0_i32, %c0_i32_0 : i32, i32
  }
  func.func @transform_10(%arg0: i32) -> (i32, i32) {
    %c0_i32 = arith.constant 0 : i32
    %c0_i32_0 = arith.constant 0 : i32
    %c0_i32_1 = arith.constant 0 : i32
    return %c0_i32, %c0_i32_0 : i32, i32
  }
  func.func @transform_11(%arg0: i32) -> (i32, i32) {
    %c0_i32 = arith.constant 0 : i32
    %c0_i32_0 = arith.constant 0 : i32
    %c0_i32_1 = arith.constant 0 : i32
    return %c0_i32, %c0_i32_0 : i32, i32
  }
  func.func @transform_12(%arg0: i32) -> (i32, i32) {
    %c0_i32 = arith.constant 0 : i32
    %c0_i32_0 = arith.constant 0 : i32
    %c0_i32_1 = arith.constant 0 : i32
    return %c0_i32, %c0_i32_0 : i32, i32
  }
  func.func @transform_13(%arg0: i32) -> (i32, i32) {
    %c0_i32 = arith.constant 0 : i32
    %c0_i32_0 = arith.constant 0 : i32
    %c0_i32_1 = arith.constant 0 : i32
    return %c0_i32, %c0_i32_0 : i32, i32
  }
  func.func @transform_14(%arg0: i32) -> (i32, i32) {
    %c0_i32 = arith.constant 0 : i32
    %c0_i32_0 = arith.constant 0 : i32
    return %arg0, %c0_i32 : i32, i32
  }
}

</mosaic_0001>

<bundles_post_ra>
// kernel: tpu_custom_call.1
= control target key start
LH: loop header
LB: loop body
LE: loop exit
PB: predicated region body
PF: predicated region fallthrough
CT: control target
= control target key end

     0   :  { %19 = vsyncpa [#allocation3], 0  ;;  %s1467_s0 = inlined_call_operand.hbm [shape: f32[8,32], index: 0, kind: input, shape index: {}]   ;;  %s1468_s1 = inlined_call_operand.hbm [shape: f32[8,16], index: 1, kind: input, shape index: {}]   ;;  %s1469_s2 = inlined_call_operand.hbm [shape: bf16[32,128], index: 2, kind: input, shape index: {}]   ;;  %s1470_s3 = inlined_call_operand.vmem [shape: f32[1,128], index: 3, kind: input, shape index: {}]   ;;  %s1471_s4 = inlined_call_operand.hbm [shape: bf16[128,128], index: 4, kind: input, shape index: {}]   ;;  %s1472_s5 = inlined_call_operand.vmem [shape: f32[1,128], index: 5, kind: input, shape index: {}]   ;;  %s1473_s6 = inlined_call_operand.hbm [shape: bf16[128,128], index: 6, kind: input, shape index: {}]   ;;  %s1474_s7 = inlined_call_operand.vmem [shape: f32[1,128], index: 7, kind: input, shape index: {}]   ;;  %s1475_s8 = inlined_call_operand.hbm [shape: bf16[128,256], index: 8, kind: input, shape index: {}]   ;;  %s1476_s9 = inlined_call_operand.vmem [shape: f32[1,256], index: 9, kind: input, shape index: {}]   ;;  %s1477_s10 = inlined_call_operand.vmem [shape: bf16[16,128], index: 10, kind: input, shape index: {}]   ;;  %s1478_s11 = inlined_call_operand.vmem [shape: f32[1,128], index: 11, kind: input, shape index: {}]   ;;  %s1479_s12 = inlined_call_operand.hbm [shape: bf16[128,128], index: 12, kind: input, shape index: {}]   ;;  %s1480_s13 = inlined_call_operand.vmem [shape: f32[1,128], index: 13, kind: input, shape index: {}]   ;;  %s1481_s14 = inlined_call_operand.hbm [shape: f32[8,128], index: 14, kind: output, shape index: {}]  }
   0x1   :  { %20 = vsyncpa [#allocation6], 0 }
   0x2   :  { %21 = vsyncpa [#allocation9], 0 }
   0x3   :  { %22 = vsyncpa [#allocation12], 0 }
   0x4   :  { %23 = vsyncpa [#allocation4], 0  ;;  %s1211_s29 = smov [#allocation5]   ;;  %s1025_s17 = scalar_lea.hbm %s1468_s1, 128 }
   0x5   :  { %s40_s30 = sshll.u32 %s1211_s29, 4  ;;  %p1026_p0 = scmp.ne.s32.totalorder %s1468_s1, %s1025_s17  ;;  %s41_s30 = int_to_ptr.vmem [resolvable:$true] %s40_s30 }
   0x6   :  { %p1029_p1 = scmp.lt.u32.totalorder %s1025_s17, %s1468_s1 }
   0x8   :  { %p1031_p2 = pnand %p1029_p1, %p1026_p0 }
   0xa   :  { %1034 = shalt.err (!%p1031_p2)
}
   0xb   :  { %s1035_s22 = scalar_lea.vmem %s41_s30, 128  ;;  %p1040_p4 = scmp.lt.s32.totalorder %s41_s30, %s41_s30 }
   0xc   :  { %p1036_p3 = scmp.ne.s32.totalorder %s41_s30, %s1035_s22  ;;  %p1041_p5 = scmp.lt.s32.totalorder %s1035_s22, %s1035_s22 }
   0xe   :  { %p1042_p6 = por %p1041_p5, %p1040_p4 }
  0x10   :  { %p1043_p7 = pnand %p1042_p6, %p1036_p3 }
  0x12   :  { %1046 = shalt.err (!%p1043_p7)
}
  0x13   :  { %43 = dma.hbm_to_vmem [thread:$0]  %s1468_s1, 128, %s41_s30, [#allocation6]  }
  0x14   :  { %s1212_s25 = smov [#allocation8]   ;;  %s1213_s27 = smov [#allocation11]  }
  0x15   :  { %s63_s26 = sshll.u32 %s1212_s25, 4  ;;  %s91_s28 = sshll.u32 %s1213_s27, 4  ;;  %s64_s26 = int_to_ptr.vmem [resolvable:$true] %s63_s26  ;;  %s92_s28 = int_to_ptr.vmem [resolvable:$true] %s91_s28 }
  0x16   :  { %s1047_s16 = scalar_lea.hbm %s1471_s4, 1024 }
  0x17   :  { %p1048_p8 = scmp.ne.s32.totalorder %s1471_s4, %s1047_s16  ;;  %p1051_p9 = scmp.lt.u32.totalorder %s1047_s16, %s1471_s4 }
  0x19   :  { %p1053_p10 = pnand %p1051_p9, %p1048_p8 }
  0x1b   :  { %1056 = shalt.err (!%p1053_p10)
}
  0x1c   :  { %s1057_s1 = scalar_lea.vmem %s64_s26, 1024  ;;  %p1062_p12 = scmp.lt.s32.totalorder %s64_s26, %s64_s26 }
  0x1d   :  { %p1058_p11 = scmp.ne.s32.totalorder %s64_s26, %s1057_s1  ;;  %p1063_p13 = scmp.lt.s32.totalorder %s1057_s1, %s1057_s1 }
  0x1f   :  { %p1064_p0 = por %p1063_p13, %p1062_p12 }
  0x21   :  { %p1065_p1 = pnand %p1064_p0, %p1058_p11 }
  0x23   :  { %1068 = shalt.err (!%p1065_p1)
}
  0x24   :  { %s1214_s30 = smov 64   ;;  %s1215_s21 = smov 4  }
  0x25   :  { %69 = dma.hbm_to_vmem [thread:$0]  %s1471_s4, 1024, %s64_s26, [#allocation9], %s1214_s30, %s1214_s30, %s1215_s21  }
  0x26   :  { %s1069_s27 = scalar_lea.hbm %s1475_s8, 2048 }
  0x27   :  { %p1070_p2 = scmp.ne.s32.totalorder %s1475_s8, %s1069_s27  ;;  %p1073_p3 = scmp.lt.u32.totalorder %s1069_s27, %s1475_s8 }
  0x29   :  { %p1075_p4 = pnand %p1073_p3, %p1070_p2 }
  0x2b   :  { %1078 = shalt.err (!%p1075_p4)
}
  0x2c   :  { %s1079_s18 = scalar_lea.vmem %s92_s28, 2048  ;;  %p1084_p6 = scmp.lt.s32.totalorder %s92_s28, %s92_s28 }
  0x2d   :  { %p1080_p5 = scmp.ne.s32.totalorder %s92_s28, %s1079_s18  ;;  %p1085_p7 = scmp.lt.s32.totalorder %s1079_s18, %s1079_s18 }
  0x2f   :  { %p1086_p8 = por %p1085_p7, %p1084_p6 }
  0x31   :  { %p1087_p9 = pnand %p1086_p8, %p1080_p5 }
  0x33   :  { %1090 = shalt.err (!%p1087_p9)
}
  0x34   :  { %s1216_s4 = smov 128   ;;  %s1217_s26 = smov 8  }
  0x35   :  { %97 = dma.hbm_to_vmem [thread:$0]  %s1475_s8, 2048, %s92_s28, [#allocation12], %s1216_s4, %s1216_s4, %s1217_s26  }
  0x36   :  { %s1218_s1 = smov [#allocation2]   ;;  %s1219_s23 = smov [#allocation7]  }
  0x37   :  { %s30_s22 = sshll.u32 %s1218_s1, 4  ;;  %s49_s24 = sshll.u32 %s1219_s23, 4  ;;  %s31_s22 = int_to_ptr.vmem [resolvable:$true] %s30_s22  ;;  %s50_s24 = int_to_ptr.vmem [resolvable:$true] %s49_s24 }
  0x38   :  { %s1091_s29 = scalar_lea.hbm %s1467_s0, 128 }
  0x39   :  { %p1092_p10 = scmp.ne.s32.totalorder %s1467_s0, %s1091_s29  ;;  %p1095_p11 = scmp.lt.u32.totalorder %s1091_s29, %s1467_s0 }
  0x3b   :  { %p1097_p12 = pnand %p1095_p11, %p1092_p10 }
  0x3d   :  { %1100 = shalt.err (!%p1097_p12)
}
  0x3e   :  { %s1101_s8 = scalar_lea.vmem %s31_s22, 128  ;;  %p1106_p0 = scmp.lt.s32.totalorder %s31_s22, %s31_s22 }
  0x3f   :  { %p1102_p13 = scmp.ne.s32.totalorder %s31_s22, %s1101_s8  ;;  %p1107_p1 = scmp.lt.s32.totalorder %s1101_s8, %s1101_s8 }
  0x41   :  { %p1108_p2 = por %p1107_p1, %p1106_p0 }
  0x43   :  { %p1109_p3 = pnand %p1108_p2, %p1102_p13 }
  0x45   :  { %1112 = shalt.err (!%p1109_p3)
}
  0x46   :  { %33 = dma.hbm_to_vmem [thread:$0]  %s1467_s0, 128, %s31_s22, [#allocation3]  }
  0x47   :  { %s1113_s20 = scalar_lea.hbm %s1469_s2, 256 }
  0x48   :  { %p1114_p4 = scmp.ne.s32.totalorder %s1469_s2, %s1113_s20  ;;  %p1117_p5 = scmp.lt.u32.totalorder %s1113_s20, %s1469_s2 }
  0x4a   :  { %p1119_p6 = pnand %p1117_p5, %p1114_p4 }
  0x4c   :  { %1122 = shalt.err (!%p1119_p6)
}
  0x4d   :  { %s1123_s29 = scalar_lea.vmem %s50_s24, 256  ;;  %p1128_p8 = scmp.lt.s32.totalorder %s50_s24, %s50_s24 }
  0x4e   :  { %p1124_p7 = scmp.ne.s32.totalorder %s50_s24, %s1123_s29  ;;  %p1129_p9 = scmp.lt.s32.totalorder %s1123_s29, %s1123_s29 }
  0x50   :  { %p1130_p10 = por %p1129_p9, %p1128_p8 }
  0x52   :  { %p1131_p11 = pnand %p1130_p10, %p1124_p7 }
  0x54   :  { %1134 = shalt.err (!%p1131_p11)
}
  0x55   :  { %55 = dma.hbm_to_vmem [thread:$0]  %s1469_s2, 256, %s50_s24, [#allocation6], %s1214_s30, %s1214_s30, %s1215_s21  }
  0x56   :  { %s1220_s15 = smov [#allocation10]   ;;  %s1221_s17 = smov [#allocation13]  }
  0x57   :  { %s77_s16 = sshll.u32 %s1220_s15, 4  ;;  %s109_s18 = sshll.u32 %s1221_s17, 4  ;;  %s78_s16 = int_to_ptr.vmem [resolvable:$true] %s77_s16  ;;  %s110_s18 = int_to_ptr.vmem [resolvable:$true] %s109_s18 }
  0x58   :  { %s1135_s4 = scalar_lea.hbm %s1473_s6, 1024 }
  0x59   :  { %p1136_p12 = scmp.ne.s32.totalorder %s1473_s6, %s1135_s4  ;;  %p1139_p13 = scmp.lt.u32.totalorder %s1135_s4, %s1473_s6 }
  0x5b   :  { %p1141_p0 = pnand %p1139_p13, %p1136_p12 }
  0x5d   :  { %1144 = shalt.err (!%p1141_p0)
}
  0x5e   :  { %s1145_s2 = scalar_lea.vmem %s78_s16, 1024  ;;  %p1150_p2 = scmp.lt.s32.totalorder %s78_s16, %s78_s16 }
  0x5f   :  { %p1146_p1 = scmp.ne.s32.totalorder %s78_s16, %s1145_s2  ;;  %p1151_p3 = scmp.lt.s32.totalorder %s1145_s2, %s1145_s2 }
  0x61   :  { %p1152_p4 = por %p1151_p3, %p1150_p2 }
  0x63   :  { %p1153_p5 = pnand %p1152_p4, %p1146_p1 }
  0x65   :  { %1156 = shalt.err (!%p1153_p5)
}
  0x66   :  { %83 = dma.hbm_to_vmem [thread:$0]  %s1473_s6, 1024, %s78_s16, [#allocation9], %s1214_s30, %s1214_s30, %s1215_s21  }
  0x67   :  { %s1157_s29 = scalar_lea.hbm %s1479_s12, 1024 }
  0x68   :  { %p1158_p6 = scmp.ne.s32.totalorder %s1479_s12, %s1157_s29  ;;  %p1161_p7 = scmp.lt.u32.totalorder %s1157_s29, %s1479_s12 }
  0x6a   :  { %p1163_p8 = pnand %p1161_p7, %p1158_p6 }
  0x6c   :  { %1166 = shalt.err (!%p1163_p8)
}
  0x6d   :  { %s1167_s8 = scalar_lea.vmem %s110_s18, 1024  ;;  %p1172_p10 = scmp.lt.s32.totalorder %s110_s18, %s110_s18 }
  0x6e   :  { %p1168_p9 = scmp.ne.s32.totalorder %s110_s18, %s1167_s8  ;;  %p1173_p11 = scmp.lt.s32.totalorder %s1167_s8, %s1167_s8 }
  0x70   :  { %p1174_p12 = por %p1173_p11, %p1172_p10 }
  0x72   :  { %p1175_p13 = pnand %p1174_p12, %p1168_p9 }
  0x74   :  { %1178 = shalt.err (!%p1175_p13)
}
  0x75   :  { %115 = dma.hbm_to_vmem [thread:$0]  %s1479_s12, 1024, %s110_s18, [#allocation12], %s1214_s30, %s1214_s30, %s1215_s21  }
  0x76   :  { %1201 = dma.done.wait [#allocation3], 128  }
  0x77   :  { %1202 = vsyncadd [#allocation3], 4294967168 }
  0x78   :  { %1203 = dma.done.wait [#allocation6], 384  }
  0x79   :  { %1204 = vsyncadd [#allocation6], 4294966912 }
  0x7a   :  { %1205 = dma.done.wait [#allocation9], 2048  }
  0x7b   :  { %1206 = vsyncadd [#allocation9], 4294965248 }
  0x7c   :  { %1207 = dma.done.wait [#allocation12], 3072  }
  0x7d   :  { %1208 = vsyncadd [#allocation12], 4294964224  ;;  %v1222_v0 = vmov 0.0   ;;  %vm1223_vm0 = vmmov 0   ;;  %v968_v1 = vld [vmem:[#allocation7] sm:$0xff]   ;;  %v969_v2 = vld [vmem:[#allocation7 + $0x8] sm:$0xff]   ;;  %v455_v63 = vlaneseq }
  0x7e   :  { %879 = vmatprep.subr.bf16.mxu1 %v1222_v0  ;;  %883 = vmatprep.mubr.msk.bf16.mxu1 %vm1223_vm0, %v1222_v0  ;;  %v140_v3 = vld [vmem:[#allocation2] sm:$0xff]  ;;  %vm165_vm1 = vcmask 261120   ;;  %v971_v6 = vld [vmem:[#allocation8 + $0x8] sm:$0xff]   ;;  %v972_v7 = vld [vmem:[#allocation8 + $0x10] sm:$0xff]   ;;  %v1224_v53 = vmov 0   ;;  %vm608_vm2 = vcmask 130048  }
  0x7f   :  { %907 = vmatprep.subr.bf16.mxu0 %v1222_v0  ;;  %923 = vmatprep.mubr.msk.bf16.mxu0 %vm1223_vm0, %v1222_v0  ;;  %v141_v4 = vpack.c.bf16 %v140_v3, %v140_v3  ;;  %v970_v5 = vld [vmem:[#allocation8] sm:$0xff]   ;;  %v973_v8 = vld [vmem:[#allocation8 + $0x18] sm:$0xff]   ;;  %v975_v10 = vld [vmem:[#allocation8 + $0x28] sm:$0xff]  }
  0x80   :  { %880 = vmatpush3.bf16.msra.mxu1 %v968_v1  ;;  %v974_v9 = vld [vmem:[#allocation8 + $0x20] sm:$0xff]   ;;  %v976_v11 = vld [vmem:[#allocation8 + $0x30] sm:$0xff]   ;;  %v977_v12 = vld [vmem:[#allocation8 + $0x38] sm:$0xff]   ;;  %v456_v1 = vshrl.u32 %v455_v63, 7 }
  0x81   :  { %881 = vmatprep.subr.bf16.mxu1 %v1222_v0  ;;  %v978_v13 = vld [vmem:[#allocation10] sm:$0xff]   ;;  %v979_v14 = vld [vmem:[#allocation10 + $0x8] sm:$0xff]   ;;  %v980_v15 = vld [vmem:[#allocation10 + $0x10] sm:$0xff]  }
  0x82   :  { %908 = vmatpush3.bf16.msra.mxu0 %v978_v13  ;;  %v981_v16 = vld [vmem:[#allocation10 + $0x18] sm:$0xff]   ;;  %v982_v17 = vld [vmem:[#allocation10 + $0x20] sm:$0xff]   ;;  %v983_v18 = vld [vmem:[#allocation10 + $0x28] sm:$0xff]  }
  0x83   :  { %909 = vmatprep.subr.bf16.mxu0 %v1222_v0  ;;  %v797_v19 = vld [vmem:[%s1470_s3] ss:$0 sm:$0xff]  ;;  %v984_v27 = vld [vmem:[#allocation10 + $0x30] sm:$0xff]   ;;  %v985_v28 = vld [vmem:[#allocation10 + $0x38] sm:$0xff]  }
  0x84   :  { %882 = vmatpush3.bf16.msra.mxu1 %v969_v2  ;;  %v986_v29 = vld [vmem:[#allocation11] ss:$8 sps:$4 sm:$0xff]   ;;  %v988_v30 = vld [vmem:[#allocation11 + $0x4] ss:$8 sps:$4 sm:$0xff]   ;;  %v991_v31 = vld [vmem:[#allocation11 + $0x14] ss:$8 sps:$4 sm:$0xff]  }
  0x85   :  { %887 = vmatprep.subr.bf16.mxu1 %v1222_v0  ;;  %v989_v32 = vld [vmem:[#allocation11 + $0x10] ss:$8 sps:$4 sm:$0xff]   ;;  %v994_v33 = vld [vmem:[#allocation11 + $0x24] ss:$8 sps:$4 sm:$0xff]   ;;  %v992_v34 = vld [vmem:[#allocation11 + $0x20] ss:$8 sps:$4 sm:$0xff]  }
  0x86   :  { %910 = vmatpush3.bf16.msra.mxu0 %v979_v14  ;;  %v997_v35 = vld [vmem:[#allocation11 + $0x34] ss:$8 sps:$4 sm:$0xff]   ;;  %v995_v36 = vld [vmem:[#allocation11 + $0x30] ss:$8 sps:$4 sm:$0xff]   ;;  %v1000_v37 = vld [vmem:[#allocation11 + $0x44] ss:$8 sps:$4 sm:$0xff]  }
  0x87   :  { %884 = vmatmul.mubr.msk.bf16.vlgmr.msra.gmra.mrb[0].mxu1 %vm165_vm1, %v141_v4  ;;  %911 = vmatprep.subr.bf16.mxu0 %v1222_v0  ;;  %v998_v38 = vld [vmem:[#allocation11 + $0x40] ss:$8 sps:$4 sm:$0xff]   ;;  %v1003_v39 = vld [vmem:[#allocation11 + $0x54] ss:$8 sps:$4 sm:$0xff]   ;;  %v1001_v40 = vld [vmem:[#allocation11 + $0x50] ss:$8 sps:$4 sm:$0xff]  }
  0x88   :  { %888 = vmatpush3.bf16.msra.mxu1 %v970_v5  ;;  %903 = vmatprep.mubr.msk.bf16.mxu1 %vm1223_vm0, %v1222_v0  ;;  %v1006_v41 = vld [vmem:[#allocation11 + $0x64] ss:$8 sps:$4 sm:$0xff]   ;;  %v1004_v42 = vld [vmem:[#allocation11 + $0x60] ss:$8 sps:$4 sm:$0xff]   ;;  %v1009_v51 = vld [vmem:[#allocation11 + $0x74] ss:$8 sps:$4 sm:$0xff]  }
  0x89   :  { %889 = vmatprep.subr.bf16.mxu1 %v1222_v0  ;;  %v801_v43 = vld [vmem:[%s1472_s5] ss:$0 sm:$0xff]  ;;  %v1007_v52 = vld [vmem:[#allocation11 + $0x70] ss:$8 sps:$4 sm:$0xff]   ;;  %v461_v2 = vsub.s32 1, %v456_v1  ;;  %v589_v14 = vld [vmem:[#allocation5] sm:$0xff] }
  0x8a   :  { %912 = vmatpush3.bf16.msra.mxu0 %v980_v15  ;;  %v810_v54 = vld [vmem:[%s1474_s7] ss:$0 sm:$0xff] }
  0x8b   :  { %913 = vmatprep.subr.bf16.mxu0 %v1222_v0  ;;  %v1010_v62 = vld [vmem:[%s1477_s10] sm:$0xff]  }
  0x8c   :  { %890 = vmatpush3.bf16.msra.mxu1 %v971_v6  ;;  %v453_v3 = vld [vmem:[%s1476_s9] sm:$0x3] }
  0x8d   :  { %891 = vmatprep.subr.bf16.mxu1 %v1222_v0  ;;  %v462_v4 = vrot.slane %v453_v3, %v461_v2 }
  0x8e   :  { %914 = vmatpush3.bf16.msra.mxu0 %v981_v16 }
  0x8f   :  { %915 = vmatprep.subr.bf16.mxu0 %v1222_v0 }
  0x90   :  { %892 = vmatpush3.bf16.msra.mxu1 %v972_v7 }
  0x91   :  { %893 = vmatprep.subr.bf16.mxu1 %v1222_v0 }
  0x92   :  { %916 = vmatpush3.bf16.msra.mxu0 %v982_v17 }
  0x93   :  { %917 = vmatprep.subr.bf16.mxu0 %v1222_v0 }
  0x94   :  { %894 = vmatpush3.bf16.msra.mxu1 %v973_v8 }
  0x95   :  { %895 = vmatprep.subr.bf16.mxu1 %v1222_v0 }
  0x96   :  { %918 = vmatpush3.bf16.msra.mxu0 %v983_v18 }
  0x97   :  { %919 = vmatprep.subr.bf16.mxu0 %v1222_v0 }
  0x98   :  { %896 = vmatpush3.bf16.msra.mxu1 %v974_v9 }
  0x99   :  { %897 = vmatprep.subr.bf16.mxu1 %v1222_v0 }
  0x9a   :  { %920 = vmatpush3.bf16.msra.mxu0 %v984_v27  ;;  %v1018_v27 = vld [vmem:[#allocation13 + $0x38] sm:$0xff]  }
  0x9b   :  { %921 = vmatprep.subr.bf16.mxu0 %v1222_v0 }
  0x9c   :  { %898 = vmatpush3.bf16.msra.mxu1 %v975_v10 }
  0x9d   :  { %899 = vmatprep.subr.bf16.mxu1 %v1222_v0 }
  0x9e   :  { %922 = vmatpush3.bf16.msra.mxu0 %v985_v28  ;;  %v835_v28 = vld [vmem:[%s1478_s11] ss:$0 sm:$0xff]  ;;  %s1225_s11 = smov [#allocation14]  }
  0x9f   :  { %927 = vmatprep.subr.bf16.mxu0 %v1222_v0  ;;  %s785_s1 = sshll.u32 %s1225_s11, 4  ;;  %s786_s1 = int_to_ptr.vmem [resolvable:$true] %s785_s1 }
  0xa0   :  { %900 = vmatpush3.bf16.msra.mxu1 %v976_v11  ;;  %p1184_p1 = scmp.lt.s32.totalorder %s786_s1, %s786_s1 }
  0xa1   :  { %901 = vmatprep.subr.bf16.mxu1 %v1222_v0 }
  0xa4   :  { %902 = vmatpush3.bf16.msra.mxu1 %v977_v12  ;;  %v457_v12 = vsub.s32 0, %v456_v1 }
  0xa5   :  { %545 = vmatprep.subr.bf16.mxu1 %v988_v30 }
  0xa6   :  { %v458_v13 = vrot.slane %v453_v3, %v457_v12 }
 0x15a   :  { %v203_v20 = vpop.f32.mrb[0].mxu1 }
 0x15b   :  { %v204_v21 = vadd.f32 %v797_v19, %v203_v20  ;;  %v885_v22 = vpop.f32.mrb[1].mxu1  ;;  %v1011_v19 = vld [vmem:[#allocation13] sm:$0xff]  }
 0x15c   :  { %v206_v23 = vpop.f32.mrb[2].mxu1  ;;  %v1013_v22 = vld [vmem:[#allocation13 + $0x10] sm:$0xff]  }
 0x15d   :  { %v209_v24 = vmax.f32 %v204_v21, 0.0  ;;  %v886_v25 = vpop.f32.mrb[3].mxu1  ;;  %v1012_v21 = vld [vmem:[#allocation13 + $0x8] sm:$0xff]   ;;  %v1014_v23 = vld [vmem:[#allocation13 + $0x18] sm:$0xff]  }
 0x15e   :  { %v1016_v25 = vld [vmem:[#allocation13 + $0x28] sm:$0xff]  }
 0x15f   :  { %v210_v26 = vpack.c.bf16 %v209_v24, %v209_v24  ;;  %v1015_v24 = vld [vmem:[#allocation13 + $0x20] sm:$0xff]  }
 0x161   :  { %904 = vmatmul.mubr.bf16.vlgmr.msra.gmra.mrb[4].mxu1 %v210_v26  ;;  %v1017_v26 = vld [vmem:[#allocation13 + $0x30] sm:$0xff]  }
 0x162   :  { %546 = vmatpush1.bf16.msra.mxu1 %v986_v29  ;;  %577 = vmatprep.mubr.bf16.mxu1 %v1224_v53 }
 0x163   :  { %547 = vmatprep.subr.bf16.mxu1 %v991_v31 }
 0x166   :  { %548 = vmatpush1.bf16.msra.mxu1 %v989_v32 }
 0x167   :  { %549 = vmatprep.subr.bf16.mxu1 %v994_v33 }
 0x16a   :  { %550 = vmatpush1.bf16.msra.mxu1 %v992_v34 }
 0x16b   :  { %551 = vmatprep.subr.bf16.mxu1 %v997_v35 }
 0x16e   :  { %552 = vmatpush1.bf16.msra.mxu1 %v995_v36  ;;  %v766_v36 = vand.u32 127, %v455_v63 }
 0x16f   :  { %553 = vmatprep.subr.bf16.mxu1 %v1000_v37  ;;  %v838_v37 = vld [vmem:[%s1480_s13] ss:$0 sm:$0xff]  ;;  %s1179_s13 = scalar_lea.vmem %s786_s1, 128 }
 0x170   :  { %vm767_vm3 = vcmp.lt.s32.totalorder %v766_v36, 8  ;;  %p1180_p0 = scmp.ne.s32.totalorder %s786_s1, %s1179_s13  ;;  %p1185_p2 = scmp.lt.s32.totalorder %s1179_s13, %s1179_s13 }
 0x172   :  { %554 = vmatpush1.bf16.msra.mxu1 %v998_v38  ;;  %p1186_p3 = por %p1185_p2, %p1184_p1 }
 0x173   :  { %555 = vmatprep.subr.bf16.mxu1 %v1003_v39 }
 0x174   :  { %p1187_p4 = pnand %p1186_p3, %p1180_p0 }
 0x176   :  { %556 = vmatpush1.bf16.msra.mxu1 %v1001_v40 }
 0x177   :  { %557 = vmatprep.subr.bf16.mxu1 %v1006_v41 }
 0x17a   :  { %558 = vmatpush1.bf16.msra.mxu1 %v1004_v42 }
 0x17b   :  { %559 = vmatprep.subr.bf16.mxu1 %v1009_v51 }
 0x17e   :  { %560 = vmatpush1.bf16.msra.mxu1 %v1007_v52 }
 0x234   :  { %v316_v44 = vpop.f32.mrb[4].mxu1 }
 0x235   :  { %v317_v45 = vadd.f32 %v801_v43, %v316_v44  ;;  %v905_v46 = vpop.f32.mrb[5].mxu1 }
 0x236   :  { %v319_v47 = vpop.f32.mrb[6].mxu1 }
 0x237   :  { %v322_v48 = vmax.f32 %v317_v45, 0.0  ;;  %v906_v49 = vpop.f32.mrb[7].mxu1 }
 0x239   :  { %v323_v50 = vpack.c.bf16 %v322_v48, %v322_v48 }
 0x23b   :  { %924 = vmatmul.mubr.bf16.vlgmr.msra.gmra.mrb[0].mxu0 %v323_v50 }
 0x23c   :  { %929 = vmatprep.mubr.msk.bf16.mxu0 %vm1223_vm0, %v1222_v0  ;;  %928 = vmatpush3.bf16.msra.mxu0 %v1010_v62 }
 0x23d   :  { %933 = vmatprep.subr.bf16.mxu0 %v1222_v0 }
 0x30e   :  { %v429_v55 = vpop.f32.mrb[0].mxu0 }
 0x30f   :  { %v430_v56 = vadd.f32 %v810_v54, %v429_v55  ;;  %v925_v57 = vpop.f32.mrb[1].mxu0 }
 0x310   :  { %v432_v58 = vpop.f32.mrb[2].mxu0 }
 0x311   :  { %v435_v59 = vmax.f32 %v430_v56, 0.0  ;;  %v926_v60 = vpop.f32.mrb[3].mxu0 }
 0x313   :  { %v436_v61 = vpack.c.bf16 %v435_v59, %v435_v59 }
 0x315   :  { %578 = vmatmul.mubr.bf16.vlgmr.msra.gmra.mrb[8].mxu1 %v436_v61 }
 0x3e8   :  { %v579_v5 = vpop.f32.mrb[8].mxu1 }
 0x3e9   :  { %v581_v6 = vpop.f32.mrb[9].mxu1  ;;  %v580_v16 = vadd.f32 %v579_v5, %v458_v13 }
 0x3ea   :  { %v582_v7 = vadd.f32 %v581_v6, %v462_v4  ;;  %v583_v8 = vpop.f32.mrb[10].mxu1 }
 0x3eb   :  { %v584_v9 = vpop.f32.mrb[11].mxu1 }
 0x3ec   :  { %v586_v10 = vmul.f32 0.5, %v582_v7 }
 0x3ee   :  { %v587_v11 = vmul.f32 1.442695, %v586_v10 }
 0x3f0   :  { %1019 = vpow2.f32 %v587_v11 }
 0x3fa   :  { %v1020_v15 = vpop.eup %1019 }
 0x3fb   :  { %v590_v17 = vmul.f32 %v1020_v15, %v589_v14 }
 0x3fd   :  { %v591_v18 = vadd.f32 %v590_v17, %v580_v16 }
 0x3ff   :  { %v592_v20 = vpack.c.bf16 %v591_v18, %v591_v18 }
 0x401   :  { %930 = vmatmul.mubr.msk.bf16.vlgmr.msra.gmra.mrb[4].mxu0 %vm608_vm2, %v592_v20 }
 0x402   :  { %934 = vmatpush3.bf16.msra.mxu0 %v1011_v19  ;;  %949 = vmatprep.mubr.msk.bf16.mxu0 %vm1223_vm0, %v1222_v0 }
 0x403   :  { %935 = vmatprep.subr.bf16.mxu0 %v1222_v0 }
 0x406   :  { %936 = vmatpush3.bf16.msra.mxu0 %v1012_v21 }
 0x407   :  { %937 = vmatprep.subr.bf16.mxu0 %v1222_v0 }
 0x40a   :  { %938 = vmatpush3.bf16.msra.mxu0 %v1013_v22 }
 0x40b   :  { %939 = vmatprep.subr.bf16.mxu0 %v1222_v0 }
 0x40e   :  { %940 = vmatpush3.bf16.msra.mxu0 %v1014_v23 }
 0x40f   :  { %941 = vmatprep.subr.bf16.mxu0 %v1222_v0 }
 0x412   :  { %942 = vmatpush3.bf16.msra.mxu0 %v1015_v24 }
 0x413   :  { %943 = vmatprep.subr.bf16.mxu0 %v1222_v0 }
 0x416   :  { %944 = vmatpush3.bf16.msra.mxu0 %v1016_v25 }
 0x417   :  { %945 = vmatprep.subr.bf16.mxu0 %v1222_v0 }
 0x41a   :  { %946 = vmatpush3.bf16.msra.mxu0 %v1017_v26 }
 0x41b   :  { %947 = vmatprep.subr.bf16.mxu0 %v1222_v0 }
 0x41e   :  { %948 = vmatpush3.bf16.msra.mxu0 %v1018_v27 }
 0x4d4   :  { %v646_v29 = vpop.f32.mrb[4].mxu0 }
 0x4d5   :  { %v647_v30 = vadd.f32 %v835_v28, %v646_v29  ;;  %v931_v31 = vpop.f32.mrb[5].mxu0 }
 0x4d6   :  { %v649_v32 = vpop.f32.mrb[6].mxu0 }
 0x4d7   :  { %v652_v33 = vmax.f32 %v647_v30, 0.0  ;;  %v932_v34 = vpop.f32.mrb[7].mxu0 }
 0x4d9   :  { %v653_v35 = vpack.c.bf16 %v652_v33, %v652_v33 }
 0x4db   :  { %950 = vmatmul.mubr.bf16.vlgmr.msra.gmra.mrb[8].mxu0 %v653_v35 }
 0x5ae   :  { %v759_v0 = vpop.f32.mrb[8].mxu0 }
 0x5af   :  { %v760_v38 = vadd.f32 %v838_v37, %v759_v0  ;;  %v951_v39 = vpop.f32.mrb[9].mxu0 }
 0x5b0   :  { %v762_v40 = vpop.f32.mrb[10].mxu0 }
 0x5b1   :  { %v952_v41 = vpop.f32.mrb[11].mxu0  ;;  %v768_v42 = vsel %vm767_vm3, %v760_v38, -inf }
 0x5b2   :  { %769 = vmax.xlane.f32.xlu0 %v768_v42 }
 0x63f   :  { %v770_v43 = vpop.xlane.xlu0 %769 }
 0x640   :  { %v771_v44 = vsub.f32 %v768_v42, %v770_v43 }
 0x642   :  { %v772_v45 = vmul.f32 1.442695, %v771_v44 }
 0x644   :  { %1021 = vpow2.f32 %v772_v45 }
 0x64e   :  { %v1022_v46 = vpop.eup %1021 }
 0x64f   :  { %774 = vadd.xlane.f32.xlu0 %v1022_v46 }
 0x6dc   :  { %v775_v47 = vpop.xlane.xlu0 %774 }
 0x6dd   :  { %1023 = vrcp.f32 %v775_v47 }
 0x6e7   :  { %v1024_v48 = vpop.eup %1023 }
 0x6e8   :  { %v777_v49 = vmul.f32 %v1024_v48, %v1022_v46 }
 0x6ea   :  { %778 = vst [vmem:[#allocation14] sm:$0xff] %v777_v49 }
 0x6eb   :  { %1190 = shalt.err (!%p1187_p4)
}
 0x6ec   :  { %s1191_s23 = scalar_lea.hbm %s1481_s14, 128 }
 0x6ed   :  { %p1192_p5 = scmp.ne.s32.totalorder %s1481_s14, %s1191_s23  ;;  %p1195_p6 = scmp.lt.u32.totalorder %s1191_s23, %s1481_s14 }
 0x6ef   :  { %p1197_p7 = pnand %p1195_p6, %p1192_p5 }
 0x6f1   :  { %1200 = shalt.err (!%p1197_p7)
}
 0x6f2   :  { %788 = dma.vmem_to_hbm [thread:$0]  %s786_s1, 128, %s1481_s14, [#allocation4]  }
 0x6f3   :  { %1209 = dma.done.wait [#allocation4], 128  }
 0x6f4   :  { %1210 = vsyncadd [#allocation4], 4294967168 }
 0x6f5   :  { %792 = vsyncpa [#allocation3], 1 }
 0x6f6   :  { %793 = vsyncpa [#allocation6], 1 }
 0x6f7   :  { %794 = vsyncpa [#allocation9], 1 }
 0x6f8   :  { %795 = vsyncpa [#allocation12], 1 }
 0x6f9   :  { %796 = vsyncpa [#allocation4], 1 }

// kernel: tpu_custom_call.1
= control target key start
LH: loop header
LB: loop body
LE: loop exit
PB: predicated region body
PF: predicated region fallthrough
CT: control target
= control target key end

     0   :  { %19 = vsyncpa [#allocation3], 0  ;;  %s1467_s0 = inlined_call_operand.hbm [shape: f32[8,32], index: 0, kind: input, shape index: {}]   ;;  %s1468_s1 = inlined_call_operand.hbm [shape: f32[8,16], index: 1, kind: input, shape index: {}]   ;;  %s1469_s2 = inlined_call_operand.hbm [shape: bf16[32,128], index: 2, kind: input, shape index: {}]   ;;  %s1470_s3 = inlined_call_operand.vmem [shape: f32[1,128], index: 3, kind: input, shape index: {}]   ;;  %s1471_s4 = inlined_call_operand.hbm [shape: bf16[128,128], index: 4, kind: input, shape index: {}]   ;;  %s1472_s5 = inlined_call_operand.vmem [shape: f32[1,128], index: 5, kind: input, shape index: {}]   ;;  %s1473_s6 = inlined_call_operand.hbm [shape: bf16[128,128], index: 6, kind: input, shape index: {}]   ;;  %s1474_s7 = inlined_call_operand.vmem [shape: f32[1,128], index: 7, kind: input, shape index: {}]   ;;  %s1475_s8 = inlined_call_operand.hbm [shape: bf16[128,256], index: 8, kind: input, shape index: {}]   ;;  %s1476_s9 = inlined_call_operand.vmem [shape: f32[1,256], index: 9, kind: input, shape index: {}]   ;;  %s1477_s10 = inlined_call_operand.vmem [shape: bf16[16,128], index: 10, kind: input, shape index: {}]   ;;  %s1478_s11 = inlined_call_operand.vmem [shape: f32[1,128], index: 11, kind: input, shape index: {}]   ;;  %s1479_s12 = inlined_call_operand.hbm [shape: bf16[128,128], index: 12, kind: input, shape index: {}]   ;;  %s1480_s13 = inlined_call_operand.vmem [shape: f32[1,128], index: 13, kind: input, shape index: {}]   ;;  %s1481_s14 = inlined_call_operand.hbm [shape: f32[8,128], index: 14, kind: output, shape index: {}]  }
   0x1   :  { %20 = vsyncpa [#allocation6], 0 }
   0x2   :  { %21 = vsyncpa [#allocation9], 0 }
   0x3   :  { %22 = vsyncpa [#allocation12], 0 }
   0x4   :  { %23 = vsyncpa [#allocation4], 0  ;;  %s1211_s29 = smov [#allocation5]   ;;  %s1025_s17 = scalar_lea.hbm %s1468_s1, 128 }
   0x5   :  { %s40_s30 = sshll.u32 %s1211_s29, 4  ;;  %p1026_p0 = scmp.ne.s32.totalorder %s1468_s1, %s1025_s17  ;;  %s41_s30 = int_to_ptr.vmem [resolvable:$true] %s40_s30 }
   0x6   :  { %p1029_p1 = scmp.lt.u32.totalorder %s1025_s17, %s1468_s1 }
   0x8   :  { %p1031_p2 = pnand %p1029_p1, %p1026_p0 }
   0xa   :  { %1034 = shalt.err (!%p1031_p2)
}
   0xb   :  { %s1035_s22 = scalar_lea.vmem %s41_s30, 128  ;;  %p1040_p4 = scmp.lt.s32.totalorder %s41_s30, %s41_s30 }
   0xc   :  { %p1036_p3 = scmp.ne.s32.totalorder %s41_s30, %s1035_s22  ;;  %p1041_p5 = scmp.lt.s32.totalorder %s1035_s22, %s1035_s22 }
   0xe   :  { %p1042_p6 = por %p1041_p5, %p1040_p4 }
  0x10   :  { %p1043_p7 = pnand %p1042_p6, %p1036_p3 }
  0x12   :  { %1046 = shalt.err (!%p1043_p7)
}
  0x13   :  { %43 = dma.hbm_to_vmem [thread:$0]  %s1468_s1, 128, %s41_s30, [#allocation6]  }
  0x14   :  { %s1212_s25 = smov [#allocation8]   ;;  %s1213_s27 = smov [#allocation11]  }
  0x15   :  { %s63_s26 = sshll.u32 %s1212_s25, 4  ;;  %s91_s28 = sshll.u32 %s1213_s27, 4  ;;  %s64_s26 = int_to_ptr.vmem [resolvable:$true] %s63_s26  ;;  %s92_s28 = int_to_ptr.vmem [resolvable:$true] %s91_s28 }
  0x16   :  { %s1047_s16 = scalar_lea.hbm %s1471_s4, 1024 }
  0x17   :  { %p1048_p8 = scmp.ne.s32.totalorder %s1471_s4, %s1047_s16  ;;  %p1051_p9 = scmp.lt.u32.totalorder %s1047_s16, %s1471_s4 }
  0x19   :  { %p1053_p10 = pnand %p1051_p9, %p1048_p8 }
  0x1b   :  { %1056 = shalt.err (!%p1053_p10)
}
  0x1c   :  { %s1057_s1 = scalar_lea.vmem %s64_s26, 1024  ;;  %p1062_p12 = scmp.lt.s32.totalorder %s64_s26, %s64_s26 }
  0x1d   :  { %p1058_p11 = scmp.ne.s32.totalorder %s64_s26, %s1057_s1  ;;  %p1063_p13 = scmp.lt.s32.totalorder %s1057_s1, %s1057_s1 }
  0x1f   :  { %p1064_p0 = por %p1063_p13, %p1062_p12 }
  0x21   :  { %p1065_p1 = pnand %p1064_p0, %p1058_p11 }
  0x23   :  { %1068 = shalt.err (!%p1065_p1)
}
  0x24   :  { %s1214_s30 = smov 64   ;;  %s1215_s21 = smov 4  }
  0x25   :  { %69 = dma.hbm_to_vmem [thread:$0]  %s1471_s4, 1024, %s64_s26, [#allocation9], %s1214_s30, %s1214_s30, %s1215_s21  }
  0x26   :  { %s1069_s27 = scalar_lea.hbm %s1475_s8, 2048 }
  0x27   :  { %p1070_p2 = scmp.ne.s32.totalorder %s1475_s8, %s1069_s27  ;;  %p1073_p3 = scmp.lt.u32.totalorder %s1069_s27, %s1475_s8 }
  0x29   :  { %p1075_p4 = pnand %p1073_p3, %p1070_p2 }
  0x2b   :  { %1078 = shalt.err (!%p1075_p4)
}
  0x2c   :  { %s1079_s18 = scalar_lea.vmem %s92_s28, 2048  ;;  %p1084_p6 = scmp.lt.s32.totalorder %s92_s28, %s92_s28 }
  0x2d   :  { %p1080_p5 = scmp.ne.s32.totalorder %s92_s28, %s1079_s18  ;;  %p1085_p7 = scmp.lt.s32.totalorder %s1079_s18, %s1079_s18 }
  0x2f   :  { %p1086_p8 = por %p1085_p7, %p1084_p6 }
  0x31   :  { %p1087_p9 = pnand %p1086_p8, %p1080_p5 }
  0x33   :  { %1090 = shalt.err (!%p1087_p9)
}
  0x34   :  { %s1216_s4 = smov 128   ;;  %s1217_s26 = smov 8  }
  0x35   :  { %97 = dma.hbm_to_vmem [thread:$0]  %s1475_s8, 2048, %s92_s28, [#allocation12], %s1216_s4, %s1216_s4, %s1217_s26  }
  0x36   :  { %s1218_s1 = smov [#allocation2]   ;;  %s1219_s23 = smov [#allocation7]  }
  0x37   :  { %s30_s22 = sshll.u32 %s1218_s1, 4  ;;  %s49_s24 = sshll.u32 %s1219_s23, 4  ;;  %s31_s22 = int_to_ptr.vmem [resolvable:$true] %s30_s22  ;;  %s50_s24 = int_to_ptr.vmem [resolvable:$true] %s49_s24 }
  0x38   :  { %s1091_s29 = scalar_lea.hbm %s1467_s0, 128 }
  0x39   :  { %p1092_p10 = scmp.ne.s32.totalorder %s1467_s0, %s1091_s29  ;;  %p1095_p11 = scmp.lt.u32.totalorder %s1091_s29, %s1467_s0 }
  0x3b   :  { %p1097_p12 = pnand %p1095_p11, %p1092_p10 }
  0x3d   :  { %1100 = shalt.err (!%p1097_p12)
}
  0x3e   :  { %s1101_s8 = scalar_lea.vmem %s31_s22, 128  ;;  %p1106_p0 = scmp.lt.s32.totalorder %s31_s22, %s31_s22 }
  0x3f   :  { %p1102_p13 = scmp.ne.s32.totalorder %s31_s22, %s1101_s8  ;;  %p1107_p1 = scmp.lt.s32.totalorder %s1101_s8, %s1101_s8 }
  0x41   :  { %p1108_p2 = por %p1107_p1, %p1106_p0 }
  0x43   :  { %p1109_p3 = pnand %p1108_p2, %p1102_p13 }
  0x45   :  { %1112 = shalt.err (!%p1109_p3)
}
  0x46   :  { %33 = dma.hbm_to_vmem [thread:$0]  %s1467_s0, 128, %s31_s22, [#allocation3]  }
  0x47   :  { %s1113_s20 = scalar_lea.hbm %s1469_s2, 256 }
  0x48   :  { %p1114_p4 = scmp.ne.s32.totalorder %s1469_s2, %s1113_s20  ;;  %p1117_p5 = scmp.lt.u32.totalorder %s1113_s20, %s1469_s2 }
  0x4a   :  { %p1119_p6 = pnand %p1117_p5, %p1114_p4 }
  0x4c   :  { %1122 = shalt.err (!%p1119_p6)
}
  0x4d   :  { %s1123_s29 = scalar_lea.vmem %s50_s24, 256  ;;  %p1128_p8 = scmp.lt.s32.totalorder %s50_s24, %s50_s24 }
  0x4e   :  { %p1124_p7 = scmp.ne.s32.totalorder %s50_s24, %s1123_s29  ;;  %p1129_p9 = scmp.lt.s32.totalorder %s1123_s29, %s1123_s29 }
  0x50   :  { %p1130_p10 = por %p1129_p9, %p1128_p8 }
  0x52   :  { %p1131_p11 = pnand %p1130_p10, %p1124_p7 }
  0x54   :  { %1134 = shalt.err (!%p1131_p11)
}
  0x55   :  { %55 = dma.hbm_to_vmem [thread:$0]  %s1469_s2, 256, %s50_s24, [#allocation6], %s1214_s30, %s1214_s30, %s1215_s21  }
  0x56   :  { %s1220_s15 = smov [#allocation10]   ;;  %s1221_s17 = smov [#allocation13]  }
  0x57   :  { %s77_s16 = sshll.u32 %s1220_s15, 4  ;;  %s109_s18 = sshll.u32 %s1221_s17, 4  ;;  %s78_s16 = int_to_ptr.vmem [resolvable:$true] %s77_s16  ;;  %s110_s18 = int_to_ptr.vmem [resolvable:$true] %s109_s18 }
  0x58   :  { %s1135_s4 = scalar_lea.hbm %s1473_s6, 1024 }
  0x59   :  { %p1136_p12 = scmp.ne.s32.totalorder %s1473_s6, %s1135_s4  ;;  %p1139_p13 = scmp.lt.u32.totalorder %s1135_s4, %s1473_s6 }
  0x5b   :  { %p1141_p0 = pnand %p1139_p13, %p1136_p12 }
  0x5d   :  { %1144 = shalt.err (!%p1141_p0)
}
  0x5e   :  { %s1145_s2 = scalar_lea.vmem %s78_s16, 1024  ;;  %p1150_p2 = scmp.lt.s32.totalorder %s78_s16, %s78_s16 }
  0x5f   :  { %p1146_p1 = scmp.ne.s32.totalorder %s78_s16, %s1145_s2  ;;  %p1151_p3 = scmp.lt.s32.totalorder %s1145_s2, %s1145_s2 }
  0x61   :  { %p1152_p4 = por %p1151_p3, %p1150_p2 }
  0x63   :  { %p1153_p5 = pnand %p1152_p4, %p1146_p1 }
  0x65   :  { %1156 = shalt.err (!%p1153_p5)
}
  0x66   :  { %83 = dma.hbm_to_vmem [thread:$0]  %s1473_s6, 1024, %s78_s16, [#allocation9], %s1214_s30, %s1214_s30, %s1215_s21  }
  0x67   :  { %s1157_s29 = scalar_lea.hbm %s1479_s12, 1024 }
  0x68   :  { %p1158_p6 = scmp.ne.s32.totalorder %s1479_s12, %s1157_s29  ;;  %p1161_p7 = scmp.lt.u32.totalorder %s1157_s29, %s1479_s12 }
  0x6a   :  { %p1163_p8 = pnand %p1161_p7, %p1158_p6 }
  0x6c   :  { %1166 = shalt.err (!%p1163_p8)
}
  0x6d   :  { %s1167_s8 = scalar_lea.vmem %s110_s18, 1024  ;;  %p1172_p10 = scmp.lt.s32.totalorder %s110_s18, %s110_s18 }
  0x6e   :  { %p1168_p9 = scmp.ne.s32.totalorder %s110_s18, %s1167_s8  ;;  %p1173_p11 = scmp.lt.s32.totalorder %s1167_s8, %s1167_s8 }
  0x70   :  { %p1174_p12 = por %p1173_p11, %p1172_p10 }
  0x72   :  { %p1175_p13 = pnand %p1174_p12, %p1168_p9 }
  0x74   :  { %1178 = shalt.err (!%p1175_p13)
}
  0x75   :  { %115 = dma.hbm_to_vmem [thread:$0]  %s1479_s12, 1024, %s110_s18, [#allocation12], %s1214_s30, %s1214_s30, %s1215_s21  }
  0x76   :  { %1201 = dma.done.wait [#allocation3], 128  }
  0x77   :  { %1202 = vsyncadd [#allocation3], 4294967168 }
  0x78   :  { %1203 = dma.done.wait [#allocation6], 384  }
  0x79   :  { %1204 = vsyncadd [#allocation6], 4294966912 }
  0x7a   :  { %1205 = dma.done.wait [#allocation9], 2048  }
  0x7b   :  { %1206 = vsyncadd [#allocation9], 4294965248 }
  0x7c   :  { %1207 = dma.done.wait [#allocation12], 3072  }
  0x7d   :  { %1208 = vsyncadd [#allocation12], 4294964224  ;;  %v1222_v0 = vmov 0.0   ;;  %vm1223_vm0 = vmmov 0   ;;  %v968_v1 = vld [vmem:[#allocation7] sm:$0xff]   ;;  %v969_v2 = vld [vmem:[#allocation7 + $0x8] sm:$0xff]   ;;  %v455_v63 = vlaneseq }
  0x7e   :  { %879 = vmatprep.subr.bf16.mxu1 %v1222_v0  ;;  %883 = vmatprep.mubr.msk.bf16.mxu1 %vm1223_vm0, %v1222_v0  ;;  %v140_v3 = vld [vmem:[#allocation2] sm:$0xff]  ;;  %vm165_vm1 = vcmask 261120   ;;  %v971_v6 = vld [vmem:[#allocation8 + $0x8] sm:$0xff]   ;;  %v972_v7 = vld [vmem:[#allocation8 + $0x10] sm:$0xff]   ;;  %v1224_v53 = vmov 0   ;;  %vm608_vm2 = vcmask 130048  }
  0x7f   :  { %907 = vmatprep.subr.bf16.mxu0 %v1222_v0  ;;  %923 = vmatprep.mubr.msk.bf16.mxu0 %vm1223_vm0, %v1222_v0  ;;  %v141_v4 = vpack.c.bf16 %v140_v3, %v140_v3  ;;  %v970_v5 = vld [vmem:[#allocation8] sm:$0xff]   ;;  %v973_v8 = vld [vmem:[#allocation8 + $0x18] sm:$0xff]   ;;  %v975_v10 = vld [vmem:[#allocation8 + $0x28] sm:$0xff]  }
  0x80   :  { %880 = vmatpush3.bf16.msra.mxu1 %v968_v1  ;;  %v974_v9 = vld [vmem:[#allocation8 + $0x20] sm:$0xff]   ;;  %v976_v11 = vld [vmem:[#allocation8 + $0x30] sm:$0xff]   ;;  %v977_v12 = vld [vmem:[#allocation8 + $0x38] sm:$0xff]   ;;  %v456_v1 = vshrl.u32 %v455_v63, 7 }
  0x81   :  { %881 = vmatprep.subr.bf16.mxu1 %v1222_v0  ;;  %v978_v13 = vld [vmem:[#allocation10] sm:$0xff]   ;;  %v979_v14 = vld [vmem:[#allocation10 + $0x8] sm:$0xff]   ;;  %v980_v15 = vld [vmem:[#allocation10 + $0x10] sm:$0xff]  }
  0x82   :  { %908 = vmatpush3.bf16.msra.mxu0 %v978_v13  ;;  %v981_v16 = vld [vmem:[#allocation10 + $0x18] sm:$0xff]   ;;  %v982_v17 = vld [vmem:[#allocation10 + $0x20] sm:$0xff]   ;;  %v983_v18 = vld [vmem:[#allocation10 + $0x28] sm:$0xff]  }
  0x83   :  { %909 = vmatprep.subr.bf16.mxu0 %v1222_v0  ;;  %v797_v19 = vld [vmem:[%s1470_s3] ss:$0 sm:$0xff]  ;;  %v984_v27 = vld [vmem:[#allocation10 + $0x30] sm:$0xff]   ;;  %v985_v28 = vld [vmem:[#allocation10 + $0x38] sm:$0xff]  }
  0x84   :  { %882 = vmatpush3.bf16.msra.mxu1 %v969_v2  ;;  %v986_v29 = vld [vmem:[#allocation11] ss:$8 sps:$4 sm:$0xff]   ;;  %v988_v30 = vld [vmem:[#allocation11 + $0x4] ss:$8 sps:$4 sm:$0xff]   ;;  %v991_v31 = vld [vmem:[#allocation11 + $0x14] ss:$8 sps:$4 sm:$0xff]  }
  0x85   :  { %887 = vmatprep.subr.bf16.mxu1 %v1222_v0  ;;  %v989_v32 = vld [vmem:[#allocation11 + $0x10] ss:$8 sps:$4 sm:$0xff]   ;;  %v994_v33 = vld [vmem:[#allocation11 + $0x24] ss:$8 sps:$4 sm:$0xff]   ;;  %v992_v34 = vld [vmem:[#allocation11 + $0x20] ss:$8 sps:$4 sm:$0xff]  }
  0x86   :  { %910 = vmatpush3.bf16.msra.mxu0 %v979_v14  ;;  %v997_v35 = vld [vmem:[#allocation11 + $0x34] ss:$8 sps:$4 sm:$0xff]   ;;  %v995_v36 = vld [vmem:[#allocation11 + $0x30] ss:$8 sps:$4 sm:$0xff]   ;;  %v1000_v37 = vld [vmem:[#allocation11 + $0x44] ss:$8 sps:$4 sm:$0xff]  }
  0x87   :  { %884 = vmatmul.mubr.msk.bf16.vlgmr.msra.gmra.mrb[0].mxu1 %vm165_vm1, %v141_v4  ;;  %911 = vmatprep.subr.bf16.mxu0 %v1222_v0  ;;  %v998_v38 = vld [vmem:[#allocation11 + $0x40] ss:$8 sps:$4 sm:$0xff]   ;;  %v1003_v39 = vld [vmem:[#allocation11 + $0x54] ss:$8 sps:$4 sm:$0xff]   ;;  %v1001_v40 = vld [vmem:[#allocation11 + $0x50] ss:$8 sps:$4 sm:$0xff]  }
  0x88   :  { %888 = vmatpush3.bf16.msra.mxu1 %v970_v5  ;;  %903 = vmatprep.mubr.msk.bf16.mxu1 %vm1223_vm0, %v1222_v0  ;;  %v1006_v41 = vld [vmem:[#allocation11 + $0x64] ss:$8 sps:$4 sm:$0xff]   ;;  %v1004_v42 = vld [vmem:[#allocation11 + $0x60] ss:$8 sps:$4 sm:$0xff]   ;;  %v1009_v51 = vld [vmem:[#allocation11 + $0x74] ss:$8 sps:$4 sm:$0xff]  }
  0x89   :  { %889 = vmatprep.subr.bf16.mxu1 %v1222_v0  ;;  %v801_v43 = vld [vmem:[%s1472_s5] ss:$0 sm:$0xff]  ;;  %v1007_v52 = vld [vmem:[#allocation11 + $0x70] ss:$8 sps:$4 sm:$0xff]   ;;  %v461_v2 = vsub.s32 1, %v456_v1  ;;  %v589_v14 = vld [vmem:[#allocation5] sm:$0xff] }
  0x8a   :  { %912 = vmatpush3.bf16.msra.mxu0 %v980_v15  ;;  %v810_v54 = vld [vmem:[%s1474_s7] ss:$0 sm:$0xff] }
  0x8b   :  { %913 = vmatprep.subr.bf16.mxu0 %v1222_v0  ;;  %v1010_v62 = vld [vmem:[%s1477_s10] sm:$0xff]  }
  0x8c   :  { %890 = vmatpush3.bf16.msra.mxu1 %v971_v6  ;;  %v453_v3 = vld [vmem:[%s1476_s9] sm:$0x3] }
  0x8d   :  { %891 = vmatprep.subr.bf16.mxu1 %v1222_v0  ;;  %v462_v4 = vrot.slane %v453_v3, %v461_v2 }
  0x8e   :  { %914 = vmatpush3.bf16.msra.mxu0 %v981_v16 }
  0x8f   :  { %915 = vmatprep.subr.bf16.mxu0 %v1222_v0 }
  0x90   :  { %892 = vmatpush3.bf16.msra.mxu1 %v972_v7 }
  0x91   :  { %893 = vmatprep.subr.bf16.mxu1 %v1222_v0 }
  0x92   :  { %916 = vmatpush3.bf16.msra.mxu0 %v982_v17 }
  0x93   :  { %917 = vmatprep.subr.bf16.mxu0 %v1222_v0 }
  0x94   :  { %894 = vmatpush3.bf16.msra.mxu1 %v973_v8 }
  0x95   :  { %895 = vmatprep.subr.bf16.mxu1 %v1222_v0 }
  0x96   :  { %918 = vmatpush3.bf16.msra.mxu0 %v983_v18 }
  0x97   :  { %919 = vmatprep.subr.bf16.mxu0 %v1222_v0 }
  0x98   :  { %896 = vmatpush3.bf16.msra.mxu1 %v974_v9 }
  0x99   :  { %897 = vmatprep.subr.bf16.mxu1 %v1222_v0 }
  0x9a   :  { %920 = vmatpush3.bf16.msra.mxu0 %v984_v27  ;;  %v1018_v27 = vld [vmem:[#allocation13 + $0x38] sm:$0xff]  }
  0x9b   :  { %921 = vmatprep.subr.bf16.mxu0 %v1222_v0 }
  0x9c   :  { %898 = vmatpush3.bf16.msra.mxu1 %v975_v10 }
  0x9d   :  { %899 = vmatprep.subr.bf16.mxu1 %v1222_v0 }
  0x9e   :  { %922 = vmatpush3.bf16.msra.mxu0 %v985_v28  ;;  %v835_v28 = vld [vmem:[%s1478_s11] ss:$0 sm:$0xff]  ;;  %s1225_s11 = smov [#allocation14]  }
  0x9f   :  { %927 = vmatprep.subr.bf16.mxu0 %v1222_v0  ;;  %s785_s1 = sshll.u32 %s1225_s11, 4  ;;  %s786_s1 = int_to_ptr.vmem [resolvable:$true] %s785_s1 }
  0xa0   :  { %900 = vmatpush3.bf16.msra.mxu1 %v976_v11  ;;  %p1184_p1 = scmp.lt.s32.totalorder %s786_s1, %s786_s1 }
  0xa1   :  { %901 = vmatprep.subr.bf16.mxu1 %v1222_v0 }
  0xa4   :  { %902 = vmatpush3.bf16.msra.mxu1 %v977_v12  ;;  %v457_v12 = vsub.s32 0, %v456_v1 }
  0xa5   :  { %545 = vmatprep.subr.bf16.mxu1 %v988_v30 }
  0xa6   :  { %v458_v13 = vrot.slane %v453_v3, %v457_v12 }
 0x15a   :  { %v203_v20 = vpop.f32.mrb[0].mxu1 }
 0x15b   :  { %v204_v21 = vadd.f32 %v797_v19, %v203_v20  ;;  %v885_v22 = vpop.f32.mrb[1].mxu1  ;;  %v1011_v19 = vld [vmem:[#allocation13] sm:$0xff]  }
 0x15c   :  { %v206_v23 = vpop.f32.mrb[2].mxu1  ;;  %v1013_v22 = vld [vmem:[#allocation13 + $0x10] sm:$0xff]  }
 0x15d   :  { %v209_v24 = vmax.f32 %v204_v21, 0.0  ;;  %v886_v25 = vpop.f32.mrb[3].mxu1  ;;  %v1012_v21 = vld [vmem:[#allocation13 + $0x8] sm:$0xff]   ;;  %v1014_v23 = vld [vmem:[#allocation13 + $0x18] sm:$0xff]  }
 0x15e   :  { %v1016_v25 = vld [vmem:[#allocation13 + $0x28] sm:$0xff]  }
 0x15f   :  { %v210_v26 = vpack.c.bf16 %v209_v24, %v209_v24  ;;  %v1015_v24 = vld [vmem:[#allocation13 + $0x20] sm:$0xff]  }
 0x161   :  { %904 = vmatmul.mubr.bf16.vlgmr.msra.gmra.mrb[4].mxu1 %v210_v26  ;;  %v1017_v26 = vld [vmem:[#allocation13 + $0x30] sm:$0xff]  }
 0x162   :  { %546 = vmatpush1.bf16.msra.mxu1 %v986_v29  ;;  %577 = vmatprep.mubr.bf16.mxu1 %v1224_v53 }
 0x163   :  { %547 = vmatprep.subr.bf16.mxu1 %v991_v31 }
 0x166   :  { %548 = vmatpush1.bf16.msra.mxu1 %v989_v32 }
 0x167   :  { %549 = vmatprep.subr.bf16.mxu1 %v994_v33 }
 0x16a   :  { %550 = vmatpush1.bf16.msra.mxu1 %v992_v34 }
 0x16b   :  { %551 = vmatprep.subr.bf16.mxu1 %v997_v35 }
 0x16e   :  { %552 = vmatpush1.bf16.msra.mxu1 %v995_v36  ;;  %v766_v36 = vand.u32 127, %v455_v63 }
 0x16f   :  { %553 = vmatprep.subr.bf16.mxu1 %v1000_v37  ;;  %v838_v37 = vld [vmem:[%s1480_s13] ss:$0 sm:$0xff]  ;;  %s1179_s13 = scalar_lea.vmem %s786_s1, 128 }
 0x170   :  { %vm767_vm3 = vcmp.lt.s32.totalorder %v766_v36, 8  ;;  %p1180_p0 = scmp.ne.s32.totalorder %s786_s1, %s1179_s13  ;;  %p1185_p2 = scmp.lt.s32.totalorder %s1179_s13, %s1179_s13 }
 0x172   :  { %554 = vmatpush1.bf16.msra.mxu1 %v998_v38  ;;  %p1186_p3 = por %p1185_p2, %p1184_p1 }
 0x173   :  { %555 = vmatprep.subr.bf16.mxu1 %v1003_v39 }
 0x174   :  { %p1187_p4 = pnand %p1186_p3, %p1180_p0 }
 0x176   :  { %556 = vmatpush1.bf16.msra.mxu1 %v1001_v40 }
 0x177   :  { %557 = vmatprep.subr.bf16.mxu1 %v1006_v41 }
 0x17a   :  { %558 = vmatpush1.bf16.msra.mxu1 %v1004_v42 }
 0x17b   :  { %559 = vmatprep.subr.bf16.mxu1 %v1009_v51 }
 0x17e   :  { %560 = vmatpush1.bf16.msra.mxu1 %v1007_v52 }
 0x234   :  { %v316_v44 = vpop.f32.mrb[4].mxu1 }
 0x235   :  { %v317_v45 = vadd.f32 %v801_v43, %v316_v44  ;;  %v905_v46 = vpop.f32.mrb[5].mxu1 }
 0x236   :  { %v319_v47 = vpop.f32.mrb[6].mxu1 }
 0x237   :  { %v322_v48 = vmax.f32 %v317_v45, 0.0  ;;  %v906_v49 = vpop.f32.mrb[7].mxu1 }
 0x239   :  { %v323_v50 = vpack.c.bf16 %v322_v48, %v322_v48 }
 0x23b   :  { %924 = vmatmul.mubr.bf16.vlgmr.msra.gmra.mrb[0].mxu0 %v323_v50 }
 0x23c   :  { %929 = vmatprep.mubr.msk.bf16.mxu0 %vm1223_vm0, %v1222_v0  ;;  %928 = vmatpush3.bf16.msra.mxu0 %v1010_v62 }
 0x23d   :  { %933 = vmatprep.subr.bf16.mxu0 %v1222_v0 }
 0x30e   :  { %v429_v55 = vpop.f32.mrb[0].mxu0 }
 0x30f   :  { %v430_v56 = vadd.f32 %v810_v54, %v429_v55  ;;  %v925_v57 = vpop.f32.mrb[1].mxu0 }
 0x310   :  { %v432_v58 = vpop.f32.mrb[2].mxu0 }
 0x311   :  { %v435_v59 = vmax.f32 %v430_v56, 0.0  ;;  %v926_v60 = vpop.f32.mrb[3].mxu0 }
 0x313   :  { %v436_v61 = vpack.c.bf16 %v435_v59, %v435_v59 }
 0x315   :  { %578 = vmatmul.mubr.bf16.vlgmr.msra.gmra.mrb[8].mxu1 %v436_v61 }
 0x3e8   :  { %v579_v5 = vpop.f32.mrb[8].mxu1 }
 0x3e9   :  { %v581_v6 = vpop.f32.mrb[9].mxu1  ;;  %v580_v16 = vadd.f32 %v579_v5, %v458_v13 }
 0x3ea   :  { %v582_v7 = vadd.f32 %v581_v6, %v462_v4  ;;  %v583_v8 = vpop.f32.mrb[10].mxu1 }
 0x3eb   :  { %v584_v9 = vpop.f32.mrb[11].mxu1 }
 0x3ec   :  { %v586_v10 = vmul.f32 0.5, %v582_v7 }
 0x3ee   :  { %v587_v11 = vmul.f32 1.442695, %v586_v10 }
 0x3f0   :  { %1019 = vpow2.f32 %v587_v11 }
 0x3fa   :  { %v1020_v15 = vpop.eup %1019 }
 0x3fb   :  { %v590_v17 = vmul.f32 %v1020_v15, %v589_v14 }
 0x3fd   :  { %v591_v18 = vadd.f32 %v590_v17, %v580_v16 }
 0x3ff   :  { %v592_v20 = vpack.c.bf16 %v591_v18, %v591_v18 }
 0x401   :  { %930 = vmatmul.mubr.msk.bf16.vlgmr.msra.gmra.mrb[4].mxu0 %vm608_vm2, %v592_v20 }
 0x402   :  { %934 = vmatpush3.bf16.msra.mxu0 %v1011_v19  ;;  %949 = vmatprep.mubr.msk.bf16.mxu0 %vm1223_vm0, %v1222_v0 }
 0x403   :  { %935 = vmatprep.subr.bf16.mxu0 %v1222_v0 }
 0x406   :  { %936 = vmatpush3.bf16.msra.mxu0 %v1012_v21 }
 0x407   :  { %937 = vmatprep.subr.bf16.mxu0 %v1222_v0 }
 0x40a   :  { %938 = vmatpush3.bf16.msra.mxu0 %v1013_v22 }
 0x40b   :  { %939 = vmatprep.subr.bf16.mxu0 %v1222_v0 }
 0x40e   :  { %940 = vmatpush3.bf16.msra.mxu0 %v1014_v23 }
 0x40f   :  { %941 = vmatprep.subr.bf16.mxu0 %v1222_v0 }
 0x412   :  { %942 = vmatpush3.bf16.msra.mxu0 %v1015_v24 }
 0x413   :  { %943 = vmatprep.subr.bf16.mxu0 %v1222_v0 }
 0x416   :  { %944 = vmatpush3.bf16.msra.mxu0 %v1016_v25 }
 0x417   :  { %945 = vmatprep.subr.bf16.mxu0 %v1222_v0 }
 0x41a   :  { %946 = vmatpush3.bf16.msra.mxu0 %v1017_v26 }
 0x41b   :  { %947 = vmatprep.subr.bf16.mxu0 %v1222_v0 }
 0x41e   :  { %948 = vmatpush3.bf16.msra.mxu0 %v1018_v27 }
 0x4d4   :  { %v646_v29 = vpop.f32.mrb[4].mxu0 }
 0x4d5   :  { %v647_v30 = vadd.f32 %v835_v28, %v646_v29  ;;  %v931_v31 = vpop.f32.mrb[5].mxu0 }
 0x4d6   :  { %v649_v32 = vpop.f32.mrb[6].mxu0 }
 0x4d7   :  { %v652_v33 = vmax.f32 %v647_v30, 0.0  ;;  %v932_v34 = vpop.f32.mrb[7].mxu0 }
 0x4d9   :  { %v653_v35 = vpack.c.bf16 %v652_v33, %v652_v33 }
 0x4db   :  { %950 = vmatmul.mubr.bf16.vlgmr.msra.gmra.mrb[8].mxu0 %v653_v35 }
 0x5ae   :  { %v759_v0 = vpop.f32.mrb[8].mxu0 }
 0x5af   :  { %v760_v38 = vadd.f32 %v838_v37, %v759_v0  ;;  %v951_v39 = vpop.f32.mrb[9].mxu0 }
 0x5b0   :  { %v762_v40 = vpop.f32.mrb[10].mxu0 }
 0x5b1   :  { %v952_v41 = vpop.f32.mrb[11].mxu0  ;;  %v768_v42 = vsel %vm767_vm3, %v760_v38, -inf }
 0x5b2   :  { %769 = vmax.xlane.f32.xlu0 %v768_v42 }
 0x63f   :  { %v770_v43 = vpop.xlane.xlu0 %769 }
 0x640   :  { %v771_v44 = vsub.f32 %v768_v42, %v770_v43 }
 0x642   :  { %v772_v45 = vmul.f32 1.442695, %v771_v44 }
 0x644   :  { %1021 = vpow2.f32 %v772_v45 }
 0x64e   :  { %v1022_v46 = vpop.eup %1021 }
 0x64f   :  { %774 = vadd.xlane.f32.xlu0 %v1022_v46 }
 0x6dc   :  { %v775_v47 = vpop.xlane.xlu0 %774 }
 0x6dd   :  { %1023 = vrcp.f32 %v775_v47 }
 0x6e7   :  { %v1024_v48 = vpop.eup %1023 }
 0x6e8   :  { %v777_v49 = vmul.f32 %v1024_v48, %v1022_v46 }
 0x6ea   :  { %778 = vst [vmem:[#allocation14] sm:$0xff] %v777_v49 }
 0x6eb   :  { %1190 = shalt.err (!%p1187_p4)
}
 0x6ec   :  { %s1191_s23 = scalar_lea.hbm %s1481_s14, 128 }
 0x6ed   :  { %p1192_p5 = scmp.ne.s32.totalorder %s1481_s14, %s1191_s23  ;;  %p1195_p6 = scmp.lt.u32.totalorder %s1191_s23, %s1481_s14 }
 0x6ef   :  { %p1197_p7 = pnand %p1195_p6, %p1192_p5 }
 0x6f1   :  { %1200 = shalt.err (!%p1197_p7)
}
 0x6f2   :  { %788 = dma.vmem_to_hbm [thread:$0]  %s786_s1, 128, %s1481_s14, [#allocation4]  }
 0x6f3   :  { %1209 = dma.done.wait [#allocation4], 128  }
 0x6f4   :  { %1210 = vsyncadd [#allocation4], 4294967168 }
 0x6f5   :  { %792 = vsyncpa [#allocation3], 1 }
 0x6f6   :  { %793 = vsyncpa [#allocation6], 1 }
 0x6f7   :  { %794 = vsyncpa [#allocation9], 1 }
 0x6f8   :  { %795 = vsyncpa [#allocation12], 1 }
 0x6f9   :  { %796 = vsyncpa [#allocation4], 1 }

</bundles_post_ra>
